<compile_context>
chip_gen: v5e
topology: v5e:2x2
jax: 0.10.0
libtpu: 0.0.40
codegen_flags: <defaults>
</compile_context>

<pallas_src>
import functools

import jax
import jax.numpy as jnp
from jax.experimental import pallas as pl
from jax.experimental.pallas import tpu as pltpu

PRECISION = jax.lax.Precision.HIGHEST  # true-f32 MXU passes -> matches f32 ref
_VMEM_LIMIT = 32 * 1024 * 1024         # safe on v5e/v6e (128 MiB) and v7x (64 MiB)
_ONEHOT_BUDGET = 8 * 1024 * 1024       # VMEM budget for one-hot intermediates


def _round_up(x, m):
    return ((x + m - 1) // m) * m


def _cdiv(a, b):
    return (a + b - 1) // b


# ------------------------------------------------------------------ kernels ---

def _node_proj_kernel(z_ref, wnode_ref, wproj_ref, p0_ref, proj_ref):
    """Per node-tile: node-alpha p0 + 4 edge projections, node axis on lanes."""
    z = z_ref[...]                                                     # (Tn, D)
    # contract lhs dim 0 (D) with rhs dim 1 (D) -> (cols_lhs, Tn): lane-dense out
    dn = (((0,), (1,)), ((), ()))
    # node attention: softmax over 2 logits == sigmoid of the logit difference
    logit = jax.lax.dot_general(wnode_ref[...], z, dn, precision=PRECISION,
                                preferred_element_type=jnp.float32)    # (1, Tn)
    p0_ref[...] = jax.nn.sigmoid(logit)
    # per-node projections feeding the edge kernel:
    #   rows = [cor_src, cor_dst, sim_src, sim_dst]
    proj_ref[...] = jax.lax.dot_general(wproj_ref[...], z, dn,
                                        precision=PRECISION,
                                        preferred_element_type=jnp.float32)  # (4, Tn)


def _edge_kernel(ut_ref, src_ref, dst_ref, out_ref, *, n_cor_tiles):
    """Per edge-tile: gather node projections, add, sigmoid (lane-dense out)."""
    ut = ut_ref[...]                                        # (4, Np) resident
    n_pad = ut_ref.shape[1]
    tile_e = src_ref.shape[1]

    # select this tile's [src_proj, dst_proj] rows (etype known from grid pos)
    is_sim = pl.program_id(0) >= n_cor_tiles
    u_sel = jnp.where(is_sim, ut[2:4, :], ut[0:2, :])       # (2, Np)

    # gather via one-hot MXU matmul: (1, Np) x (Np, Te) -> (1, Te)
    row = jax.lax.broadcasted_iota(jnp.int32, (n_pad, tile_e), 0)
    oh_src = (row == src_ref[...]).astype(jnp.float32)      # (Np, Te)
    oh_dst = (row == dst_ref[...]).astype(jnp.float32)

    g_src = jnp.dot(u_sel[0:1, :], oh_src, precision=PRECISION,
                    preferred_element_type=jnp.float32)     # (1, Te)
    g_dst = jnp.dot(u_sel[1:2, :], oh_dst, precision=PRECISION,
                    preferred_element_type=jnp.float32)

    out_ref[...] = jax.nn.sigmoid(g_src + g_dst)            # lane-dense store


# ----------------------------------------------------------------- wrappers ---

def _node_proj_call(z_pad, w_node_diff, w_proj, tile_n):
    n_pad, d = z_pad.shape
    grid = (n_pad // tile_n,)
    return pl.pallas_call(
        _node_proj_kernel,
        out_shape=(jax.ShapeDtypeStruct((1, n_pad), jnp.float32),
                   jax.ShapeDtypeStruct((4, n_pad), jnp.float32)),
        grid_spec=pltpu.PrefetchScalarGridSpec(
            num_scalar_prefetch=0,
            grid=grid,
            in_specs=[pl.BlockSpec((tile_n, d), lambda i: (i, 0)),
                      pl.BlockSpec((d, 1), lambda i: (0, 0)),
                      pl.BlockSpec((d, 4), lambda i: (0, 0))],
            out_specs=[pl.BlockSpec((1, tile_n), lambda i: (0, i)),
                       pl.BlockSpec((4, tile_n), lambda i: (0, i))]),
        compiler_params=pltpu.CompilerParams(
            dimension_semantics=("parallel",),
            vmem_limit_bytes=_VMEM_LIMIT),
        cost_estimate=pl.CostEstimate(
            flops=2 * n_pad * d * 5,
            transcendentals=n_pad,
            bytes_accessed=4 * (n_pad * d + d * 5 + n_pad * 5)),
    )(z_pad, w_node_diff, w_proj)


def _edge_call(u_t, src_ids, dst_ids, tile_e, n_cor_tiles):
    n_pad = u_t.shape[1]
    e_pad = src_ids.shape[1]
    grid = (e_pad // tile_e,)
    kernel = functools.partial(_edge_kernel, n_cor_tiles=n_cor_tiles)
    return pl.pallas_call(
        kernel,
        out_shape=jax.ShapeDtypeStruct((1, e_pad), jnp.float32),
        grid_spec=pltpu.PrefetchScalarGridSpec(
            num_scalar_prefetch=0,
            grid=grid,
            in_specs=[pl.BlockSpec((4, n_pad), lambda i: (0, 0)),   # resident table
                      pl.BlockSpec((1, tile_e), lambda i: (0, i)),
                      pl.BlockSpec((1, tile_e), lambda i: (0, i))],
            out_specs=pl.BlockSpec((1, tile_e), lambda i: (0, i))),
        compiler_params=pltpu.CompilerParams(
            dimension_semantics=("parallel",),
            vmem_limit_bytes=_VMEM_LIMIT),
        cost_estimate=pl.CostEstimate(
            flops=2 * 2 * n_pad * e_pad,
            transcendentals=e_pad,
            bytes_accessed=4 * (2 * e_pad + 4 * n_pad + e_pad)),
    )(u_t, src_ids, dst_ids)


# --------------------------------------------------------------- the module ---

def xavier_normal(key, shape, gain):
    fan_out, fan_in = shape
    std = gain * jnp.sqrt(2.0 / (fan_in + fan_out))
    return std * jax.random.normal(key, shape, dtype=jnp.float32)


def init_params(key, input_dim):
    gain = jnp.sqrt(2.0)  # nn.init.calculate_gain('relu')
    k1, k2, k3 = jax.random.split(key, 3)
    return {
        "node_attention": xavier_normal(k1, (2, input_dim), gain),        # (2, D)
        "e_edge_attention": xavier_normal(k2, (2, 2 * input_dim), gain),  # (2, 2D)
        "i_edge_attention": xavier_normal(k3, (1, 2 * input_dim), gain),  # (1, 2D)
    }


@functools.partial(jax.jit, static_argnames=("num_dst_nodes", "mode"))
def relationship_decoupled_forward(params, feat, edges_cor, edges_sim,
                                   *, num_dst_nodes, mode):
    """feat: (N_src, D). edges_*: (src_ids, dst_ids) int32 arrays per etype.

    Returns (node_alpha, edge_e['cor'], edge_e['sim'])."""
    n_src, d = feat.shape
    z = feat  # feat_drop with p = 0.0 -> identity

    # ---- weight preprocessing (mode is static) ----
    w_node = params["node_attention"]          # (2, D)
    w_e = params["e_edge_attention"]           # (2, 2D)
    w_i = params["i_edge_attention"]           # (1, 2D)

    w_node_diff = (w_node[0] - w_node[1])[:, None]                     # (D, 1)

    def etype_vec(etype):
        if etype == mode:
            w = w_e[0] - w_e[1]    # 2-way softmax -> sigmoid of logit difference
        else:
            w = w_i[0]             # plain sigmoid logit
        return w[:d], w[d:]

    cor_s, cor_d = etype_vec("cor")
    sim_s, sim_d = etype_vec("sim")
    w_proj = jnp.stack([cor_s, cor_d, sim_s, sim_d], axis=1)           # (D, 4)

    # ---- node kernel: node-alpha p0 + per-node edge projections (lane-dense) ----
    tile_n = min(512, _round_up(n_src, 128))
    n_pad = _round_up(n_src, tile_n)
    z_pad = jnp.pad(z, ((0, n_pad - n_src), (0, 0)))

    p0_all, u_t = _node_proj_call(z_pad, w_node_diff, w_proj, tile_n)
    p0_dst = p0_all[0, :num_dst_nodes]
    node_alpha = jnp.stack([p0_dst, 1.0 - p0_dst], axis=1)             # (Nd, 2)

    # ---- edge kernel: both etypes fused into one gridded call ----
    src_c, dst_c = edges_cor
    src_s, dst_s = edges_sim
    e_cor = src_c.shape[0]
    e_sim = src_s.shape[0]
    # cap tile_e so the two (n_pad, tile_e) f32 one-hot intermediates fit budget
    tile_cap = max(128, (_ONEHOT_BUDGET // (8 * n_pad)) // 128 * 128)
    tile_e = min(2048, tile_cap, max(128, pl.next_power_of_2(e_cor + e_sim)))
    n_cor_tiles = _cdiv(e_cor, tile_e)
    n_sim_tiles = _cdiv(e_sim, tile_e)

    def pad_ids(ids, total):
        return jnp.pad(ids.astype(jnp.int32), (0, total - ids.shape[0]))

    src_all = jnp.concatenate([pad_ids(src_c, n_cor_tiles * tile_e),
                               pad_ids(src_s, n_sim_tiles * tile_e)])[None, :]
    dst_all = jnp.concatenate([pad_ids(dst_c, n_cor_tiles * tile_e),
                               pad_ids(dst_s, n_sim_tiles * tile_e)])[None, :]

    p = _edge_call(u_t, src_all, dst_all, tile_e, n_cor_tiles)[0]
    p_cor = p[:e_cor]
    p_sim = p[n_cor_tiles * tile_e: n_cor_tiles * tile_e + e_sim]

    def finalize(pp, etype):
        if etype == mode:
            return jnp.stack([pp, 1.0 - pp], axis=1)   # softmax(2) -> (E, 2)
        return pp[:, None]                             # sigmoid    -> (E, 1)

    return node_alpha, finalize(p_cor, "cor"), finalize(p_sim, "sim")


# -------------------------------------------------------------- reference ----

def reference_forward(params, feat, num_dst_nodes, edges_cor, edges_sim, mode):
    hp = jax.lax.Precision.HIGHEST
    z = feat
    z_dst = z[:num_dst_nodes]
    node_alpha = jax.nn.softmax(
        jnp.dot(z_dst, params["node_attention"].T, precision=hp), axis=1)
    outs = {}
    for etype, (src_ids, dst_ids) in (("cor", edges_cor), ("sim", edges_sim)):
        zc = jnp.concatenate([z[src_ids], z_dst[dst_ids]], axis=1)
        if etype == mode:
            outs[etype] = jax.nn.softmax(
                jnp.dot(zc, params["e_edge_attention"].T, precision=hp), axis=1)
        else:
            outs[etype] = jax.nn.sigmoid(
                jnp.dot(zc, params["i_edge_attention"].T, precision=hp))
    return node_alpha, outs["cor"], outs["sim"]


# -------------------------------------------------------------------- main ----

if __name__ == "__main__":
    key = jax.random.PRNGKey(0)
    k_feat, k_param, k_e1, k_e2, k_e3, k_e4 = jax.random.split(key, 6)

    input_dim = 32
    n_src_nodes = 16
    n_dst_nodes = 8
    n_edges_cor = 24
    n_edges_sim = 24
    mode = "cor"

    feat = jax.random.normal(k_feat, (n_src_nodes, input_dim), dtype=jnp.float32)
    params = init_params(k_param, input_dim)

    edges_cor = (
        jax.random.randint(k_e1, (n_edges_cor,), 0, n_src_nodes, dtype=jnp.int32),
        jax.random.randint(k_e2, (n_edges_cor,), 0, n_dst_nodes, dtype=jnp.int32),
    )
    edges_sim = (
        jax.random.randint(k_e3, (n_edges_sim,), 0, n_src_nodes, dtype=jnp.int32),
        jax.random.randint(k_e4, (n_edges_sim,), 0, n_dst_nodes, dtype=jnp.int32),
    )

    out = relationship_decoupled_forward(
        params, feat, edges_cor, edges_sim,
        num_dst_nodes=n_dst_nodes, mode=mode)
    out = jax.block_until_ready(out)
    node_alpha, e_cor, e_sim = out

    ref = reference_forward(params, feat, n_dst_nodes, edges_cor, edges_sim, mode)

    assert node_alpha.shape == (n_dst_nodes, 2)
    assert e_cor.shape == (n_edges_cor, 2)
    assert e_sim.shape == (n_edges_sim, 1)
    for got, want in zip(out, ref):
        assert jnp.allclose(got, want, atol=1e-5, rtol=1e-5), "mismatch vs reference"

    print("KERNEL_OK")
</pallas_src>

<mosaic_0001>
module attributes {stable_mosaic.version = 11 : i64} {
  func.func @_node_proj_kernel(%arg0: i32, %arg1: memref<128x32xf32, #tpu.memory_space<vmem>>, %arg2: memref<32x1xf32, #tpu.memory_space<vmem>>, %arg3: memref<32x4xf32, #tpu.memory_space<vmem>>, %arg4: memref<1x128xf32, #tpu.memory_space<vmem>>, %arg5: memref<4x128xf32, #tpu.memory_space<vmem>>) attributes {dimension_semantics = [#tpu.dimension_semantics<parallel>], iteration_bounds = array<i64: 1>, scalar_prefetch = 0 : i64, scratch_operands = 0 : i64, tpu.core_type = #tpu.core_type<tc>, window_params = [{transform_indices = @transform_0, window_bounds = array<i64: 128, 32>}, {pipeline_mode = #tpu.pipeline_mode<synchronous>, transform_indices = @transform_1, window_bounds = array<i64: 32, 1>}, {pipeline_mode = #tpu.pipeline_mode<synchronous>, transform_indices = @transform_2, window_bounds = array<i64: 32, 4>}, {transform_indices = @transform_3, window_bounds = array<i64: 1, 128>}, {transform_indices = @transform_4, window_bounds = array<i64: 4, 128>}]} {
    %c0 = arith.constant 0 : index
    %c0_0 = arith.constant 0 : index
    %0 = vector.load %arg1[%c0, %c0_0] : memref<128x32xf32, #tpu.memory_space<vmem>>, vector<128x32xf32>
    %c0_1 = arith.constant 0 : index
    %c0_2 = arith.constant 0 : index
    %1 = vector.load %arg2[%c0_1, %c0_2] : memref<32x1xf32, #tpu.memory_space<vmem>>, vector<32x1xf32>
    %cst = arith.constant dense<0.000000e+00> : vector<1x128xf32>
    %2 = tpu.matmul %1, %0, %cst {dimension_numbers = #tpu.dot_dimension_numbers<[0], [1], [1], [0], [0, 1, 1, 0], [], []>, precision = #tpu.contract_precision<fp32>} : vector<32x1xf32>, vector<128x32xf32>, vector<1x128xf32> -> vector<1x128xf32>
    %3 = arith.negf %2 : vector<1x128xf32>
    %4 = math.exp %3 : vector<1x128xf32>
    %cst_3 = arith.constant 1.000000e+00 : f32
    %5 = vector.broadcast %cst_3 : f32 to vector<1x128xf32>
    %6 = arith.addf %5, %4 : vector<1x128xf32>
    %7 = arith.divf %5, %6 : vector<1x128xf32>
    %c0_4 = arith.constant 0 : index
    %c0_5 = arith.constant 0 : index
    %8 = vector.load %arg4[%c0_4, %c0_5] : memref<1x128xf32, #tpu.memory_space<vmem>>, vector<1x128xf32>
    tpu.vector_store %arg4[%c0_4, %c0_5], %7 {strides = array<i32>} : memref<1x128xf32, #tpu.memory_space<vmem>>, vector<1x128xf32>,
    %c0_6 = arith.constant 0 : index
    %c0_7 = arith.constant 0 : index
    %9 = vector.load %arg3[%c0_6, %c0_7] : memref<32x4xf32, #tpu.memory_space<vmem>>, vector<32x4xf32>
    %cst_8 = arith.constant dense<0.000000e+00> : vector<4x128xf32>
    %10 = tpu.matmul %9, %0, %cst_8 {dimension_numbers = #tpu.dot_dimension_numbers<[0], [1], [1], [0], [0, 1, 1, 0], [], []>, precision = #tpu.contract_precision<fp32>} : vector<32x4xf32>, vector<128x32xf32>, vector<4x128xf32> -> vector<4x128xf32>
    %c0_9 = arith.constant 0 : index
    %c0_10 = arith.constant 0 : index
    %11 = vector.load %arg5[%c0_9, %c0_10] : memref<4x128xf32, #tpu.memory_space<vmem>>, vector<4x128xf32>
    tpu.vector_store %arg5[%c0_9, %c0_10], %10 {strides = array<i32>} : memref<4x128xf32, #tpu.memory_space<vmem>>, vector<4x128xf32>,
    return
  }
  func.func @transform_0(%arg0: i32) -> (i32, i32) {
    %c0_i32 = arith.constant 0 : i32
    %c0_i32_0 = arith.constant 0 : i32
    return %arg0, %c0_i32 : i32, i32
  }
  func.func @transform_1(%arg0: i32) -> (i32, i32) {
    %c0_i32 = arith.constant 0 : i32
    %c0_i32_0 = arith.constant 0 : i32
    %c0_i32_1 = arith.constant 0 : i32
    return %c0_i32, %c0_i32_0 : i32, i32
  }
  func.func @transform_2(%arg0: i32) -> (i32, i32) {
    %c0_i32 = arith.constant 0 : i32
    %c0_i32_0 = arith.constant 0 : i32
    %c0_i32_1 = arith.constant 0 : i32
    return %c0_i32, %c0_i32_0 : i32, i32
  }
  func.func @transform_3(%arg0: i32) -> (i32, i32) {
    %c0_i32 = arith.constant 0 : i32
    %c0_i32_0 = arith.constant 0 : i32
    return %c0_i32, %arg0 : i32, i32
  }
  func.func @transform_4(%arg0: i32) -> (i32, i32) {
    %c0_i32 = arith.constant 0 : i32
    %c0_i32_0 = arith.constant 0 : i32
    return %c0_i32, %arg0 : i32, i32
  }
}

module attributes {stable_mosaic.version = 11 : i64} {
  func.func @_edge_kernel(%arg0: i32, %arg1: memref<4x128xf32, #tpu.memory_space<vmem>>, %arg2: memref<1x128xi32, #tpu.memory_space<vmem>>, %arg3: memref<1x128xi32, #tpu.memory_space<vmem>>, %arg4: memref<1x128xf32, #tpu.memory_space<vmem>>) attributes {dimension_semantics = [#tpu.dimension_semantics<parallel>], iteration_bounds = array<i64: 2>, scalar_prefetch = 0 : i64, scratch_operands = 0 : i64, tpu.core_type = #tpu.core_type<tc>, window_params = [{pipeline_mode = #tpu.pipeline_mode<synchronous>, transform_indices = @transform_0, window_bounds = array<i64: 4, 128>}, {transform_indices = @transform_1, window_bounds = array<i64: 1, 128>}, {transform_indices = @transform_2, window_bounds = array<i64: 1, 128>}, {transform_indices = @transform_3, window_bounds = array<i64: 1, 128>}]} {
    %c0 = arith.constant 0 : index
    %c0_0 = arith.constant 0 : index
    %0 = vector.load %arg1[%c0, %c0_0] : memref<4x128xf32, #tpu.memory_space<vmem>>, vector<4x128xf32>
    %c1_i32 = arith.constant 1 : i32
    %1 = arith.cmpi sge, %arg0, %c1_i32 : i32
    %2 = vector.extract_strided_slice %0 {offsets = [2, 0], sizes = [2, 128], strides = [1, 1]} : vector<4x128xf32> to vector<2x128xf32>
    %3 = vector.extract_strided_slice %0 {offsets = [0, 0], sizes = [2, 128], strides = [1, 1]} : vector<4x128xf32> to vector<2x128xf32>
    %4 = arith.select %1, %2, %3 : vector<2x128xf32>
    %5 = tpu.iota {dimensions = array<i32: 0>} : vector<128x128xi32>
    %c0_1 = arith.constant 0 : index
    %c0_2 = arith.constant 0 : index
    %6 = vector.load %arg2[%c0_1, %c0_2] : memref<1x128xi32, #tpu.memory_space<vmem>>, vector<1x128xi32>
    %7 = vector.broadcast %6 : vector<1x128xi32> to vector<128x128xi32>
    %8 = arith.cmpi eq, %5, %7 : vector<128x128xi32>
    %9 = arith.extui %8 : vector<128x128xi1> to vector<128x128xi32>
    %10 = arith.sitofp %9 : vector<128x128xi32> to vector<128x128xf32>
    %c0_3 = arith.constant 0 : index
    %c0_4 = arith.constant 0 : index
    %11 = vector.load %arg3[%c0_3, %c0_4] : memref<1x128xi32, #tpu.memory_space<vmem>>, vector<1x128xi32>
    %12 = vector.broadcast %11 : vector<1x128xi32> to vector<128x128xi32>
    %13 = arith.cmpi eq, %5, %12 : vector<128x128xi32>
    %14 = arith.extui %13 : vector<128x128xi1> to vector<128x128xi32>
    %15 = arith.sitofp %14 : vector<128x128xi32> to vector<128x128xf32>
    %16 = vector.extract_strided_slice %4 {offsets = [0, 0], sizes = [1, 128], strides = [1, 1]} : vector<2x128xf32> to vector<1x128xf32>
    %cst = arith.constant dense<0.000000e+00> : vector<1x128xf32>
    %17 = tpu.matmul %16, %10, %cst {dimension_numbers = #tpu.dot_dimension_numbers<[1], [0], [0], [1], [0, 0, 1, 1], [], []>, precision = #tpu.contract_precision<fp32>} : vector<1x128xf32>, vector<128x128xf32>, vector<1x128xf32> -> vector<1x128xf32>
    %18 = vector.extract_strided_slice %4 {offsets = [1, 0], sizes = [1, 128], strides = [1, 1]} : vector<2x128xf32> to vector<1x128xf32>
    %cst_5 = arith.constant dense<0.000000e+00> : vector<1x128xf32>
    %19 = tpu.matmul %18, %15, %cst_5 {dimension_numbers = #tpu.dot_dimension_numbers<[1], [0], [0], [1], [0, 0, 1, 1], [], []>, precision = #tpu.contract_precision<fp32>} : vector<1x128xf32>, vector<128x128xf32>, vector<1x128xf32> -> vector<1x128xf32>
    %20 = arith.addf %17, %19 : vector<1x128xf32>
    %21 = arith.negf %20 : vector<1x128xf32>
    %22 = math.exp %21 : vector<1x128xf32>
    %cst_6 = arith.constant 1.000000e+00 : f32
    %23 = vector.broadcast %cst_6 : f32 to vector<1x128xf32>
    %24 = arith.addf %23, %22 : vector<1x128xf32>
    %25 = arith.divf %23, %24 : vector<1x128xf32>
    %c0_7 = arith.constant 0 : index
    %c0_8 = arith.constant 0 : index
    %26 = vector.load %arg4[%c0_7, %c0_8] : memref<1x128xf32, #tpu.memory_space<vmem>>, vector<1x128xf32>
    tpu.vector_store %arg4[%c0_7, %c0_8], %25 {strides = array<i32>} : memref<1x128xf32, #tpu.memory_space<vmem>>, vector<1x128xf32>,
    return
  }
  func.func @transform_0(%arg0: i32) -> (i32, i32) {
    %c0_i32 = arith.constant 0 : i32
    %c0_i32_0 = arith.constant 0 : i32
    %c0_i32_1 = arith.constant 0 : i32
    return %c0_i32, %c0_i32_0 : i32, i32
  }
  func.func @transform_1(%arg0: i32) -> (i32, i32) {
    %c0_i32 = arith.constant 0 : i32
    %c0_i32_0 = arith.constant 0 : i32
    return %c0_i32, %arg0 : i32, i32
  }
  func.func @transform_2(%arg0: i32) -> (i32, i32) {
    %c0_i32 = arith.constant 0 : i32
    %c0_i32_0 = arith.constant 0 : i32
    return %c0_i32, %arg0 : i32, i32
  }
  func.func @transform_3(%arg0: i32) -> (i32, i32) {
    %c0_i32 = arith.constant 0 : i32
    %c0_i32_0 = arith.constant 0 : i32
    return %c0_i32, %arg0 : i32, i32
  }
}

</mosaic_0001>

<bundles_post_ra>
// kernel: relationship_decoupled_forward.2
= control target key start
LH: loop header
LB: loop body
LE: loop exit
PB: predicated region body
PF: predicated region fallthrough
CT: control target
= control target key end

     0   :  { %vm68_vm0 = vcmask 261120   ;;  %s1379_s1 = inlined_call_operand.vmem [shape: f32[32,1], index: 1, kind: input, shape index: {}]   ;;  %s1380_s2 = inlined_call_operand.vmem [shape: f32[32,4], index: 2, kind: input, shape index: {}]   ;;  %s1381_s0 = inlined_call_operand.vmem [shape: f32[128,32], index: 0, kind: input, shape index: {}]   ;;  %s1382_s3 = inlined_call_operand.vmem [shape: f32[1,128], index: 3, kind: output, shape index: {0}]   ;;  %s1383_s4 = inlined_call_operand.vmem [shape: f32[4,128], index: 4, kind: output, shape index: {1}]  }
   0x1   :  { %v32_v0 = vld [vmem:[%s1379_s1] sm:$0xff]  ;;  %v31_v2 = vld [vmem:[%s1381_s0 + $0x78] sm:$0xff]  ;;  %v30_v4 = vld [vmem:[%s1381_s0 + $0x70] sm:$0xff] }
   0x2   :  { %36 = vxpose.xlu0.b32.start [1/4] (short) (narrow) %v32_v0, 8  ;;  %v481_v1 = vld [vmem:[%s1380_s2] sm:$0xff]  ;;  %v118_v3 = vsel %vm68_vm0, %v31_v2, 0  ;;  %v29_v5 = vld [vmem:[%s1381_s0 + $0x68] sm:$0xff]  ;;  %v115_v7 = vsel %vm68_vm0, %v30_v4, 0  ;;  %v27_v10 = vld [vmem:[%s1381_s0 + $0x58] sm:$0xff] }
   0x3   :  { %485 = vxpose.xlu1.b32.start [1/4] (short) (narrow) %v481_v1, 8  ;;  %v917_v6 = vand.u32 4294901760, %v118_v3  ;;  %v112_v8 = vsel %vm68_vm0, %v29_v5, 0  ;;  %v28_v9 = vld [vmem:[%s1381_s0 + $0x60] sm:$0xff]  ;;  %v927_v11 = vand.u32 4294901760, %v115_v7  ;;  %v106_v16 = vsel %vm68_vm0, %v27_v10, 0 }
   0x4   :  { %v929_v12 = vand.u32 4294901760, %v112_v8  ;;  %v109_v13 = vsel %vm68_vm0, %v28_v9, 0  ;;  %v33_v17 = vld [vmem:[%s1379_s1 + $0x8] sm:$0xff]  ;;  %v26_v20 = vld [vmem:[%s1381_s0 + $0x50] sm:$0xff]  ;;  %v962_v24 = vand.u32 4294901760, %v106_v16  ;;  %v24_v39 = vld [vmem:[%s1381_s0 + $0x40] sm:$0xff] }
   0x5   :  { %v933_v14 = vsub.f32 %v118_v3, %v917_v6  ;;  %317 = vmatpush.xpose.msra.mxu3 %v917_v6  ;;  %121 = vmatpush.xpose.msra.mxu0 %v917_v6  ;;  %v937_v15 = vand.u32 4294901760, %v109_v13  ;;  %v944_v18 = vsub.f32 %v115_v7, %v927_v11  ;;  %v482_v22 = vld [vmem:[%s1380_s2 + $0x8] sm:$0xff]  ;;  %v103_v28 = vsel %vm68_vm0, %v26_v20, 0  ;;  %v34_v38 = vld [vmem:[%s1379_s1 + $0x10] sm:$0xff]  ;;  %v23_v47 = vld [vmem:[%s1381_s0 + $0x38] sm:$0xff] }
   0x6   :  { %v947_v19 = vsub.f32 %v112_v8, %v929_v12  ;;  %v25_v29 = vld [vmem:[%s1381_s0 + $0x48] sm:$0xff]  ;;  %v983_v32 = vand.u32 4294901760, %v103_v28  ;;  %v996_v37 = vsub.f32 %v106_v16, %v962_v24  ;;  %v483_v40 = vld [vmem:[%s1380_s2 + $0x10] sm:$0xff]  ;;  %v97_v46 = vsel %vm68_vm0, %v24_v39, 0  ;;  %v35_v53 = vld [vmem:[%s1379_s1 + $0x18] sm:$0xff] }
   0x7   :  { %v953_v21 = vand.u32 4294901760, %v933_v14  ;;  %264 = vmatpush.xpose.msra.mxu2 %v933_v14  ;;  %v960_v23 = vand.u32 4294901760, %v944_v18  ;;  %v971_v27 = vsub.f32 %v109_v13, %v937_v15  ;;  %v100_v33 = vsel %vm68_vm0, %v25_v29, 0  ;;  %v484_v55 = vld [vmem:[%s1380_s2 + $0x18] sm:$0xff]  ;;  %v22_v56 = vld [vmem:[%s1381_s0 + $0x30] sm:$0xff]  ;;  %v21_v63 = vld [vmem:[%s1381_s0 + $0x28] sm:$0xff] }
   0x8   :  { %v967_v26 = vand.u32 4294901760, %v947_v19  ;;  %v1010_v41 = vsub.f32 %v103_v28, %v983_v32  ;;  %v1012_v42 = vand.u32 4294901760, %v100_v33  ;;  %v1020_v45 = vand.u32 4294901760, %v996_v37  ;;  %v20_v7 = vld [vmem:[%s1381_s0 + $0x20] sm:$0xff]  ;;  %v19_v20 = vld [vmem:[%s1381_s0 + $0x18] sm:$0xff] }
   0x9   :  { %v164_v25 = vsub.f32 %v933_v14, %v953_v21  ;;  %319 = vmatpush.xpose.msra.mxu3 %v927_v11  ;;  %v170_v30 = vsub.f32 %v944_v18, %v960_v23  ;;  %123 = vmatpush.xpose.msra.mxu0 %v927_v11  ;;  %v992_v36 = vand.u32 4294901760, %v971_v27  ;;  %v1032_v49 = vand.u32 4294901760, %v97_v46 }
   0xa   :  { %37 = vxpose.xlu0.b32.cont [2/4] (short) (narrow) %v33_v17, 8  ;;  %v176_v35 = vsub.f32 %v947_v19, %v967_v26  ;;  %v1030_v48 = vsub.f32 %v100_v33, %v1012_v42  ;;  %v188_v51 = vsub.f32 %v996_v37, %v1020_v45  ;;  %v1040_v52 = vand.u32 4294901760, %v1010_v41 }
   0xb   :  { %486 = vxpose.xlu1.b32.cont [2/4] (short) (narrow) %v482_v22, 8  ;;  %v980_v31 = vand.u32 4294901760, %v164_v25  ;;  %267 = vmatpush.xpose.msra.mxu2 %v944_v18  ;;  %v987_v34 = vand.u32 4294901760, %v170_v30  ;;  %v182_v44 = vsub.f32 %v971_v27, %v992_v36  ;;  %v94_v54 = vsel %vm68_vm0, %v23_v47, 0 }
   0xc   :  { %v1015_v43 = vand.u32 4294901760, %v176_v35  ;;  %v1056_v57 = vand.u32 4294901760, %v1030_v48  ;;  %v1059_v58 = vsub.f32 %v97_v46, %v1032_v49  ;;  %v1062_v59 = vand.u32 4294901760, %v188_v51  ;;  %v18_v35 = vld [vmem:[%s1381_s0 + $0x10] sm:$0xff]  ;;  %v17_v51 = vld [vmem:[%s1381_s0 + $0x8] sm:$0xff] }
   0xd   :  { %166 = vmatpush.xpose.msra.mxu1 %v980_v31  ;;  %321 = vmatpush.xpose.msra.mxu3 %v929_v12  ;;  %v1035_v50 = vand.u32 4294901760, %v182_v44  ;;  %v194_v60 = vsub.f32 %v1010_v41, %v1040_v52  ;;  %v1066_v61 = vand.u32 4294901760, %v94_v54  ;;  %v91_v62 = vsel %vm68_vm0, %v22_v56, 0 }
   0xe   :  { %125 = vmatpush.xpose.msra.mxu0 %v929_v12  ;;  %v200_v0 = vsub.f32 %v1030_v48, %v1056_v57  ;;  %v1078_v1 = vand.u32 4294901760, %v1059_v58  ;;  %v1086_v4 = vand.u32 4294901760, %v91_v62  ;;  %v88_v5 = vsel %vm68_vm0, %v21_v63, 0  ;;  %v16_v63 = vld [vmem:[%s1381_s0] sm:$0xff] }
   0xf   :  { %270 = vmatpush.xpose.msra.mxu2 %v947_v19  ;;  %v1081_v2 = vand.u32 4294901760, %v194_v60  ;;  %v1084_v3 = vsub.f32 %v94_v54, %v1066_v61  ;;  %v1106_v16 = vand.u32 4294901760, %v88_v5  ;;  %v85_v17 = vsel %vm68_vm0, %v20_v7, 0 }
  0x10   :  { %v1095_v8 = vand.u32 4294901760, %v200_v0  ;;  %v206_v9 = vsub.f32 %v1059_v58, %v1078_v1  ;;  %v1104_v13 = vsub.f32 %v91_v62, %v1086_v4  ;;  %v1115_v22 = vand.u32 4294901760, %v85_v17 }
  0x11   :  { %172 = vmatpush.xpose.msra.mxu1 %v987_v34  ;;  %323 = vmatpush.xpose.msra.mxu3 %v937_v15  ;;  %v1101_v10 = vand.u32 4294901760, %v1084_v3  ;;  %v1126_v30 = vsub.f32 %v88_v5, %v1106_v16  ;;  %v82_v33 = vsel %vm68_vm0, %v19_v20, 0  ;;  %v79_v47 = vsel %vm68_vm0, %v18_v35, 0 }
  0x12   :  { %38 = vxpose.xlu0.b32.cont [3/4] (short) (narrow) %v34_v38, 8  ;;  %127 = vmatpush.xpose.msra.mxu0 %v937_v15  ;;  %v1118_v25 = vand.u32 4294901760, %v206_v9  ;;  %v1123_v29 = vand.u32 4294901760, %v1104_v13  ;;  %v1136_v38 = vsub.f32 %v85_v17, %v1115_v22  ;;  %v1146_v46 = vand.u32 4294901760, %v82_v33 }
  0x13   :  { %487 = vxpose.xlu1.b32.cont [3/4] (short) (narrow) %v483_v40, 8  ;;  %273 = vmatpush.xpose.msra.mxu2 %v971_v27  ;;  %v212_v28 = vsub.f32 %v1084_v3, %v1101_v10  ;;  %v1144_v44 = vand.u32 4294901760, %v1126_v30  ;;  %v1166_v60 = vand.u32 4294901760, %v79_v47  ;;  %v76_v62 = vsel %vm68_vm0, %v17_v51, 0 }
  0x14   :  { %v218_v40 = vsub.f32 %v1104_v13, %v1123_v29  ;;  %v1164_v56 = vsub.f32 %v82_v33, %v1146_v46  ;;  %v1186_v17 = vand.u32 4294901760, %v76_v62  ;;  %v73_v20 = vsel %vm68_vm0, %v16_v63, 0 }
  0x15   :  { %178 = vmatpush.xpose.msra.mxu1 %v1015_v43  ;;  %325 = vmatpush.xpose.msra.mxu3 %v962_v24  ;;  %v1139_v39 = vand.u32 4294901760, %v212_v28  ;;  %v1184_v9 = vsub.f32 %v79_v47, %v1166_v60  ;;  %v1203_v47 = vand.u32 4294901760, %v73_v20 }
  0x16   :  { %129 = vmatpush.xpose.msra.mxu0 %v962_v24  ;;  %v1159_v54 = vand.u32 4294901760, %v218_v40  ;;  %1386 = vst [vmem:[#allocation2_spill] sm:$0xff] %v1164_v56  ;;  %v1181_v7 = vand.u32 4294901760, %v1164_v56  ;;  %v1201_v40 = vsub.f32 %v76_v62, %v1186_v17 }
  0x17   :  { %276 = vmatpush.xpose.msra.mxu2 %v996_v37  ;;  %1387 = vst [vmem:[#allocation3_spill] sm:$0xff] %v1184_v9  ;;  %v1198_v35 = vand.u32 4294901760, %v1184_v9  ;;  %v1217_v62 = vsub.f32 %v73_v20, %v1203_v47 }
  0x18   :  { %v236_v33 = vsub.f32 %v1164_v56, %v1181_v7  ;;  %v1214_v63 = vand.u32 4294901760, %v1201_v40 }
  0x19   :  { %184 = vmatpush.xpose.msra.mxu1 %v1035_v50  ;;  %327 = vmatpush.xpose.msra.mxu3 %v983_v32 }
  0x1a   :  { %39 = vxpose.xlu0.b32.end [4/4] (short) (narrow) %v35_v53, 8  ;;  %131 = vmatpush.xpose.msra.mxu0 %v983_v32  ;;  %v1156_v53 = vand.u32 4294901760, %v1136_v38  ;;  %v1209_v51 = vand.u32 4294901760, %v236_v33  ;;  %v248_v33 = vsub.f32 %v1201_v40, %v1214_v63 }
  0x1b   :  { %488 = vxpose.xlu1.b32.end [4/4] (short) (narrow) %v484_v55, 8  ;;  %279 = vmatpush.xpose.msra.mxu2 %v1010_v41  ;;  %v224_v55 = vsub.f32 %v1126_v30, %v1144_v44 }
  0x1c   :  { %v230_v0 = vsub.f32 %v1136_v38, %v1156_v53  ;;  %v249_v20 = vand.u32 4294901760, %v248_v33 }
  0x1d   :  { %190 = vmatpush.xpose.msra.mxu1 %v1062_v59  ;;  %329 = vmatpush.xpose.msra.mxu3 %v1012_v42  ;;  %v1178_v5 = vand.u32 4294901760, %v224_v55  ;;  %v242_v55 = vsub.f32 %v1184_v9, %v1198_v35 }
  0x1e   :  { %133 = vmatpush.xpose.msra.mxu0 %v1012_v42  ;;  %v1192_v28 = vand.u32 4294901760, %v230_v0 }
  0x1f   :  { %282 = vmatpush.xpose.msra.mxu2 %v1030_v48  ;;  %v1223_v0 = vand.u32 4294901760, %v242_v55 }
  0x21   :  { %196 = vmatpush.xpose.msra.mxu1 %v1081_v2  ;;  %331 = vmatpush.xpose.msra.mxu3 %v1032_v49 }
  0x22   :  { %135 = vmatpush.xpose.msra.mxu0 %v1032_v49 }
  0x23   :  { %285 = vmatpush.xpose.msra.mxu2 %v1059_v58 }
  0x25   :  { %202 = vmatpush.xpose.msra.mxu1 %v1095_v8  ;;  %333 = vmatpush.xpose.msra.mxu3 %v1066_v61 }
  0x26   :  { %137 = vmatpush.xpose.msra.mxu0 %v1066_v61 }
  0x27   :  { %288 = vmatpush.xpose.msra.mxu2 %v1084_v3 }
  0x29   :  { %208 = vmatpush.xpose.msra.mxu1 %v1118_v25  ;;  %335 = vmatpush.xpose.msra.mxu3 %v1086_v4 }
  0x2a   :  { %139 = vmatpush.xpose.msra.mxu0 %v1086_v4 }
  0x2b   :  { %291 = vmatpush.xpose.msra.mxu2 %v1104_v13 }
  0x2d   :  { %214 = vmatpush.xpose.msra.mxu1 %v1139_v39  ;;  %337 = vmatpush.xpose.msra.mxu3 %v1106_v16 }
  0x2e   :  { %141 = vmatpush.xpose.msra.mxu0 %v1106_v16 }
  0x2f   :  { %294 = vmatpush.xpose.msra.mxu2 %v1126_v30 }
  0x31   :  { %220 = vmatpush.xpose.msra.mxu1 %v1159_v54  ;;  %339 = vmatpush.xpose.msra.mxu3 %v1115_v22 }
  0x32   :  { %143 = vmatpush.xpose.msra.mxu0 %v1115_v22 }
  0x33   :  { %297 = vmatpush.xpose.msra.mxu2 %v1136_v38 }
  0x35   :  { %226 = vmatpush.xpose.msra.mxu1 %v1178_v5  ;;  %341 = vmatpush.xpose.msra.mxu3 %v1146_v46 }
  0x36   :  { %145 = vmatpush.xpose.msra.mxu0 %v1146_v46 }
  0x37   :  { %300 = vmatpush.xpose.msra.mxu2 %v1164_v56  ;;  %v1228_v56 = vand.u32 4294901760, %v1217_v62 }
  0x39   :  { %232 = vmatpush.xpose.msra.mxu1 %v1192_v28  ;;  %343 = vmatpush.xpose.msra.mxu3 %v1166_v60 }
  0x3a   :  { %147 = vmatpush.xpose.msra.mxu0 %v1166_v60 }
  0x3b   :  { %303 = vmatpush.xpose.msra.mxu2 %v1184_v9  ;;  %v254_v9 = vsub.f32 %v1217_v62, %v1228_v56 }
  0x3d   :  { %238 = vmatpush.xpose.msra.mxu1 %v1209_v51  ;;  %345 = vmatpush.xpose.msra.mxu3 %v1186_v17  ;;  %v255_v55 = vand.u32 4294901760, %v254_v9 }
  0x3e   :  { %149 = vmatpush.xpose.msra.mxu0 %v1186_v17 }
  0x3f   :  { %306 = vmatpush.xpose.msra.mxu2 %v1201_v40 }
  0x41   :  { %244 = vmatpush.xpose.msra.mxu1 %v1223_v0  ;;  %347 = vmatpush.xpose.msra.mxu3 %v1203_v47 }
  0x42   :  { %151 = vmatpush.xpose.msra.mxu0 %v1203_v47 }
  0x43   :  { %309 = vmatpush.xpose.msra.mxu2 %v1217_v62 }
  0x45   :  { %566 = vmatpush.xpose.msrb.mxu3 %v980_v31  ;;  %250 = vmatpush.xpose.msra.mxu1 %v249_v20 }
  0x46   :  { %358 = vmatpush.xpose.msrb.mxu0 %v953_v21 }
  0x47   :  { %521 = vmatpush.xpose.msrb.mxu2 %v917_v6 }
  0x49   :  { %572 = vmatpush.xpose.msrb.mxu3 %v987_v34  ;;  %256 = vmatpush.xpose.msra.mxu1 %v255_v55 }
  0x4a   :  { %362 = vmatpush.xpose.msrb.mxu0 %v960_v23 }
  0x4b   :  { %523 = vmatpush.xpose.msrb.mxu2 %v927_v11 }
  0x4d   :  { %425 = vmatpush.xpose.msrb.mxu1 %v917_v6  ;;  %578 = vmatpush.xpose.msrb.mxu3 %v1015_v43 }
  0x4e   :  { %366 = vmatpush.xpose.msrb.mxu0 %v967_v26 }
  0x4f   :  { %525 = vmatpush.xpose.msrb.mxu2 %v929_v12 }
  0x51   :  { %427 = vmatpush.xpose.msrb.mxu1 %v927_v11  ;;  %584 = vmatpush.xpose.msrb.mxu3 %v1035_v50 }
  0x52   :  { %370 = vmatpush.xpose.msrb.mxu0 %v992_v36 }
  0x53   :  { %527 = vmatpush.xpose.msrb.mxu2 %v937_v15 }
  0x55   :  { %429 = vmatpush.xpose.msrb.mxu1 %v929_v12  ;;  %590 = vmatpush.xpose.msrb.mxu3 %v1062_v59 }
  0x56   :  { %374 = vmatpush.xpose.msrb.mxu0 %v1020_v45 }
  0x57   :  { %529 = vmatpush.xpose.msrb.mxu2 %v962_v24 }
  0x59   :  { %431 = vmatpush.xpose.msrb.mxu1 %v937_v15  ;;  %596 = vmatpush.xpose.msrb.mxu3 %v1081_v2 }
  0x5a   :  { %378 = vmatpush.xpose.msrb.mxu0 %v1040_v52 }
  0x5b   :  { %531 = vmatpush.xpose.msrb.mxu2 %v983_v32 }
  0x5d   :  { %433 = vmatpush.xpose.msrb.mxu1 %v962_v24  ;;  %602 = vmatpush.xpose.msrb.mxu3 %v1095_v8 }
  0x5e   :  { %382 = vmatpush.xpose.msrb.mxu0 %v1056_v57 }
  0x5f   :  { %533 = vmatpush.xpose.msrb.mxu2 %v1012_v42 }
  0x61   :  { %435 = vmatpush.xpose.msrb.mxu1 %v983_v32  ;;  %608 = vmatpush.xpose.msrb.mxu3 %v1118_v25 }
  0x62   :  { %386 = vmatpush.xpose.msrb.mxu0 %v1078_v1 }
  0x63   :  { %535 = vmatpush.xpose.msrb.mxu2 %v1032_v49 }
  0x65   :  { %437 = vmatpush.xpose.msrb.mxu1 %v1012_v42  ;;  %614 = vmatpush.xpose.msrb.mxu3 %v1139_v39 }
  0x66   :  { %390 = vmatpush.xpose.msrb.mxu0 %v1101_v10 }
  0x67   :  { %537 = vmatpush.xpose.msrb.mxu2 %v1066_v61 }
  0x69   :  { %439 = vmatpush.xpose.msrb.mxu1 %v1032_v49  ;;  %620 = vmatpush.xpose.msrb.mxu3 %v1159_v54 }
  0x6a   :  { %394 = vmatpush.xpose.msrb.mxu0 %v1123_v29 }
  0x6b   :  { %539 = vmatpush.xpose.msrb.mxu2 %v1086_v4 }
  0x6d   :  { %441 = vmatpush.xpose.msrb.mxu1 %v1066_v61  ;;  %626 = vmatpush.xpose.msrb.mxu3 %v1178_v5 }
  0x6e   :  { %398 = vmatpush.xpose.msrb.mxu0 %v1144_v44 }
  0x6f   :  { %541 = vmatpush.xpose.msrb.mxu2 %v1106_v16 }
  0x71   :  { %443 = vmatpush.xpose.msrb.mxu1 %v1086_v4  ;;  %632 = vmatpush.xpose.msrb.mxu3 %v1192_v28 }
  0x72   :  { %402 = vmatpush.xpose.msrb.mxu0 %v1156_v53 }
  0x73   :  { %543 = vmatpush.xpose.msrb.mxu2 %v1115_v22 }
  0x75   :  { %445 = vmatpush.xpose.msrb.mxu1 %v1106_v16  ;;  %638 = vmatpush.xpose.msrb.mxu3 %v1209_v51 }
  0x76   :  { %406 = vmatpush.xpose.msrb.mxu0 %v1181_v7 }
  0x77   :  { %545 = vmatpush.xpose.msrb.mxu2 %v1146_v46 }
  0x79   :  { %447 = vmatpush.xpose.msrb.mxu1 %v1115_v22  ;;  %644 = vmatpush.xpose.msrb.mxu3 %v1223_v0 }
  0x7a   :  { %410 = vmatpush.xpose.msrb.mxu0 %v1198_v35 }
  0x7b   :  { %547 = vmatpush.xpose.msrb.mxu2 %v1166_v60 }
  0x7d   :  { %449 = vmatpush.xpose.msrb.mxu1 %v1146_v46  ;;  %650 = vmatpush.xpose.msrb.mxu3 %v249_v20 }
  0x7e   :  { %414 = vmatpush.xpose.msrb.mxu0 %v1214_v63 }
  0x7f   :  { %549 = vmatpush.xpose.msrb.mxu2 %v1186_v17 }
  0x81   :  { %451 = vmatpush.xpose.msrb.mxu1 %v1166_v60  ;;  %656 = vmatpush.xpose.msrb.mxu3 %v255_v55 }
  0x82   :  { %418 = vmatpush.xpose.msrb.mxu0 %v1228_v56 }
  0x83   :  { %551 = vmatpush.xpose.msrb.mxu2 %v1203_v47 }
  0x85   :  { %453 = vmatpush.xpose.msrb.mxu1 %v1186_v17 }
  0x89   :  { %455 = vmatpush.xpose.msrb.mxu1 %v1203_v47 }
  0xa6   :  { %v52_v31 = vpop.trf.xlu0 }
  0xa7   :  { %v70_v34 = vsel %vm68_vm0, %v52_v31, 0  ;;  %v501_v25 = vpop.trf.xlu1 }
  0xa8   :  { %v152_v43 = vand.u32 4294901760, %v70_v34 }
  0xaa   :  { %v153_v50 = vsub.f32 %v70_v34, %v152_v43  ;;  %258 = vmatmul.f32.vlgmr.msra.gmra.mxu1 %v152_v43 }
  0xab   :  { %717 = vmatpush.xpose.msra.mxu1 %v917_v6 }
  0xac   :  { %312 = vmatmul.f32.vlgmr.msra.gmra.mxu2 %v153_v50  ;;  %v154_v59 = vand.u32 4294901760, %v153_v50 }
  0xad   :  { %758 = vmatpush.xpose.msra.mxu2 %v953_v21  ;;  %v518_v21 = vsel %vm68_vm0, %v501_v25, 0 }
  0xae   :  { %351 = vmatmul.f32.vlgmr.msra.gmra.mxu3 %v154_v59  ;;  %v155_v2 = vsub.f32 %v153_v50, %v154_v59  ;;  %v1312_v39 = vand.u32 4294901760, %v518_v21 }
  0xaf   :  { %719 = vmatpush.xpose.msra.mxu1 %v927_v11  ;;  %825 = vmatpush.xpose.msra.mxu3 %v917_v6 }
  0xb0   :  { %v156_v8 = vand.u32 4294901760, %v155_v2  ;;  %v553_v6 = vsub.f32 %v518_v21, %v1312_v39 }
  0xb1   :  { %762 = vmatpush.xpose.msra.mxu2 %v960_v23 }
  0xb2   :  { %157 = vmatmul.f32.vlgmr.msra.gmra.mxu0 %v156_v8  ;;  %457 = vmatmul.f32.vlgmr.msrb.gmra.mxu1 %v152_v43 }
  0xb3   :  { %664 = vmatpush.xpose.msra.mxu0 %v933_v14  ;;  %721 = vmatpush.xpose.msra.mxu1 %v929_v12 }
  0xb4   :  { %827 = vmatpush.xpose.msra.mxu3 %v927_v11  ;;  %v554_v11 = vand.u32 4294901760, %v553_v6 }
  0xb5   :  { %766 = vmatpush.xpose.msra.mxu2 %v967_v26 }
  0xb6   :  { %658 = vmatmul.f32.vlgmr.msrb.gmra.mxu3 %v1312_v39  ;;  %v555_v14 = vsub.f32 %v553_v6, %v554_v11 }
  0xb7   :  { %667 = vmatpush.xpose.msra.mxu0 %v944_v18  ;;  %723 = vmatpush.xpose.msra.mxu1 %v937_v15  ;;  %v1389_v18 = vld [vmem:[#allocation3_spill] sm:$0xff] }
  0xb8   :  { %829 = vmatpush.xpose.msra.mxu3 %v929_v12  ;;  %v556_v12 = vand.u32 4294901760, %v555_v14 }
  0xb9   :  { %770 = vmatpush.xpose.msra.mxu2 %v992_v36 }
  0xba   :  { %420 = vmatmul.f32.vlgmr.msrb.gmra.mxu0 %v152_v43  ;;  %557 = vmatmul.f32.vlgmr.msrb.gmra.mxu2 %v556_v12 }
  0xbb   :  { %670 = vmatpush.xpose.msra.mxu0 %v947_v19  ;;  %725 = vmatpush.xpose.msra.mxu1 %v962_v24 }
  0xbc   :  { %831 = vmatpush.xpose.msra.mxu3 %v937_v15  ;;  %v1388_v15 = vld [vmem:[#allocation2_spill] sm:$0xff] }
  0xbd   :  { %774 = vmatpush.xpose.msra.mxu2 %v1020_v45 }
  0xbf   :  { %673 = vmatpush.xpose.msra.mxu0 %v971_v27  ;;  %727 = vmatpush.xpose.msra.mxu1 %v983_v32 }
  0xc0   :  { %833 = vmatpush.xpose.msra.mxu3 %v962_v24 }
  0xc1   :  { %778 = vmatpush.xpose.msra.mxu2 %v1040_v52 }
  0xc3   :  { %676 = vmatpush.xpose.msra.mxu0 %v996_v37  ;;  %729 = vmatpush.xpose.msra.mxu1 %v1012_v42 }
  0xc4   :  { %835 = vmatpush.xpose.msra.mxu3 %v983_v32 }
  0xc5   :  { %782 = vmatpush.xpose.msra.mxu2 %v1056_v57 }
  0xc7   :  { %679 = vmatpush.xpose.msra.mxu0 %v1010_v41  ;;  %731 = vmatpush.xpose.msra.mxu1 %v1032_v49 }
  0xc8   :  { %837 = vmatpush.xpose.msra.mxu3 %v1012_v42 }
  0xc9   :  { %786 = vmatpush.xpose.msra.mxu2 %v1078_v1 }
  0xcb   :  { %682 = vmatpush.xpose.msra.mxu0 %v1030_v48  ;;  %733 = vmatpush.xpose.msra.mxu1 %v1066_v61 }
  0xcc   :  { %839 = vmatpush.xpose.msra.mxu3 %v1032_v49 }
  0xcd   :  { %790 = vmatpush.xpose.msra.mxu2 %v1101_v10 }
  0xcf   :  { %685 = vmatpush.xpose.msra.mxu0 %v1059_v58  ;;  %735 = vmatpush.xpose.msra.mxu1 %v1086_v4 }
  0xd0   :  { %841 = vmatpush.xpose.msra.mxu3 %v1066_v61 }
  0xd1   :  { %794 = vmatpush.xpose.msra.mxu2 %v1123_v29 }
  0xd3   :  { %688 = vmatpush.xpose.msra.mxu0 %v1084_v3  ;;  %737 = vmatpush.xpose.msra.mxu1 %v1106_v16 }
  0xd4   :  { %843 = vmatpush.xpose.msra.mxu3 %v1086_v4 }
  0xd5   :  { %798 = vmatpush.xpose.msra.mxu2 %v1144_v44 }
  0xd7   :  { %691 = vmatpush.xpose.msra.mxu0 %v1104_v13  ;;  %739 = vmatpush.xpose.msra.mxu1 %v1115_v22 }
  0xd8   :  { %845 = vmatpush.xpose.msra.mxu3 %v1106_v16 }
  0xd9   :  { %802 = vmatpush.xpose.msra.mxu2 %v1156_v53 }
  0xdb   :  { %694 = vmatpush.xpose.msra.mxu0 %v1126_v30  ;;  %741 = vmatpush.xpose.msra.mxu1 %v1146_v46 }
  0xdc   :  { %847 = vmatpush.xpose.msra.mxu3 %v1115_v22 }
  0xdd   :  { %806 = vmatpush.xpose.msra.mxu2 %v1181_v7 }
  0xdf   :  { %697 = vmatpush.xpose.msra.mxu0 %v1136_v38  ;;  %743 = vmatpush.xpose.msra.mxu1 %v1166_v60 }
  0xe0   :  { %849 = vmatpush.xpose.msra.mxu3 %v1146_v46 }
  0xe1   :  { %810 = vmatpush.xpose.msra.mxu2 %v1198_v35 }
  0xe3   :  { %700 = vmatpush.xpose.msra.mxu0 %v1388_v15  ;;  %745 = vmatpush.xpose.msra.mxu1 %v1186_v17 }
  0xe4   :  { %851 = vmatpush.xpose.msra.mxu3 %v1166_v60 }
  0xe5   :  { %814 = vmatpush.xpose.msra.mxu2 %v1214_v63 }
  0xe7   :  { %703 = vmatpush.xpose.msra.mxu0 %v1389_v18  ;;  %747 = vmatpush.xpose.msra.mxu1 %v1203_v47 }
  0xe8   :  { %853 = vmatpush.xpose.msra.mxu3 %v1186_v17 }
  0xe9   :  { %818 = vmatpush.xpose.msra.mxu2 %v1228_v56 }
  0xea   :  { %751 = vmatmul.f32.vlgmr.msra.gmra.mxu1 %v554_v11 }
  0xeb   :  { %706 = vmatpush.xpose.msra.mxu0 %v1201_v40 }
  0xec   :  { %855 = vmatpush.xpose.msra.mxu3 %v1203_v47  ;;  %820 = vmatmul.f32.vlgmr.msra.gmra.mxu2 %v1312_v39 }
  0xef   :  { %857 = vmatmul.f32.vlgmr.msra.gmra.mxu3 %v1312_v39  ;;  %709 = vmatpush.xpose.msra.mxu0 %v1217_v62 }
  0xf2   :  { %712 = vmatmul.f32.vlgmr.msra.gmra.mxu0 %v553_v6 }
 0x127   :  { %v259_v19 = vpop.f32.mrf.mxu1 }
 0x12f   :  { %v158_v23 = vpop.f32.mrf.mxu0  ;;  %v313_v26 = vpop.f32.mrf.mxu2 }
 0x130   :  { %v260_v24 = vadd.f32 %v259_v19, %v158_v23  ;;  %v458_v42 = vpop.f32.mrf.mxu1 }
 0x131   :  { %v352_v32 = vpop.f32.mrf.mxu3 }
 0x132   :  { %v314_v27 = vadd.f32 %v313_v26, %v260_v24 }
 0x134   :  { %v353_v36 = vadd.f32 %v352_v32, %v314_v27 }
 0x137   :  { %v421_v37 = vpop.f32.mrf.mxu0 }
 0x138   :  { %v422_v41 = vadd.f32 %v421_v37, %v353_v36 }
 0x139   :  { %v659_v30 = vpop.f32.mrf.mxu3 }
 0x13a   :  { %v459_v45 = vadd.f32 %v458_v42, %v422_v41 }
 0x13c   :  { %v870_v48 = vmul.f32 -1.442695, %v459_v45 }
 0x13d   :  { %v558_v29 = vpop.f32.mrf.mxu2 }
 0x13e   :  { %872 = vpow2.f32 %v870_v48  ;;  %v660_v38 = vadd.f32 %v659_v30, %v558_v29 }
 0x144   :  { %v873_v49 = vpop.eup %872 }
 0x145   :  { %v464_v52 = vadd.f32 1.0, %v873_v49 }
 0x147   :  { %874 = vrcp.f32 %v464_v52  ;;  %v476_v1 = vand.u32 2147483648, %v464_v52  ;;  %v474_v4 = vand.u32 2147483647, %v464_v52  ;;  %vm470_vm2 = vweird.f32 %v464_v52 }
 0x149   :  { %v477_v13 = vor.u32 1.1754944e-38, %v476_v1  ;;  %vm475_vm4 = vcmp.eq.f32.partialorder %v474_v4, 8.507059e+37 }
 0x14d   :  { %v875_v57 = vpop.eup %874 }
 0x14e   :  { %v466_v58 = vmul.f32 %v875_v57, %v464_v52  ;;  %vm471_vm1 = vweird.f32 %v875_v57 }
 0x14f   :  { %vm472_vm3 = vmor %vm470_vm2, %vm471_vm1 }
 0x150   :  { %v467_v61 = vsub.f32 1.0, %v466_v58 }
 0x152   :  { %v468_v3 = vmul.f32 %v875_v57, %v467_v61 }
 0x154   :  { %v469_v10 = vadd.f32 %v875_v57, %v468_v3 }
 0x156   :  { %v473_v16 = vsel %vm472_vm3, %v875_v57, %v469_v10 }
 0x157   :  { %v478_v22 = vsel %vm475_vm4, %v477_v13, %v473_v16 }
 0x158   :  { %480 = vst [vmem:[%s1382_s3] sm:$0x1] %v478_v22 }
 0x167   :  { %v752_v53 = vpop.f32.mrf.mxu1 }
 0x16f   :  { %v713_v44 = vpop.f32.mrf.mxu0  ;;  %v821_v56 = vpop.f32.mrf.mxu2 }
 0x170   :  { %v714_v46 = vadd.f32 %v713_v44, %v660_v38 }
 0x172   :  { %v753_v54 = vadd.f32 %v752_v53, %v714_v46  ;;  %v858_v5 = vpop.f32.mrf.mxu3 }
 0x174   :  { %v822_v60 = vadd.f32 %v821_v56, %v753_v54 }
 0x176   :  { %v859_v7 = vadd.f32 %v858_v5, %v822_v60 }
 0x178   :  { %861 = vst [vmem:[%s1383_s4] sm:$0xf] %v859_v7 }

// kernel: relationship_decoupled_forward.3
= control target key start
LH: loop header
LB: loop body
LE: loop exit
PB: predicated region body
PF: predicated region fallthrough
CT: control target
= control target key end

     0   :  { %s1243_s12 = smov 0   ;;  %s2241_s0 = inlined_call_operand.vmem [shape: f32[4,128], index: 0, kind: input, shape index: {}]   ;;  %s2242_s1 = inlined_call_operand.vmem [shape: s32[1,256], index: 1, kind: input, shape index: {}]   ;;  %s2243_s2 = inlined_call_operand.vmem [shape: s32[1,256], index: 2, kind: input, shape index: {}]   ;;  %s2244_s3 = inlined_call_operand.vmem [shape: f32[1,256], index: 3, kind: output, shape index: {}]  }
   0x1 LB: > { %s1249_s13 = sadd.s32 4294967295, %s1219_s12   ;;  %p1065_p0 = scmp.ge.s32.totalorder %s1219_s12, 1  ;;  %s1219_s12 = sphi %s1243_s12, %s13_s12  }
   0x2   : > { %p143_p1 = scmp.lt.s32.totalorder %s1219_s12, 3 }
   0x4   : > { %p144_p2 = pnand %p1065_p0, %p143_p1 }
   0x5   : > { %p166_p3 = scmp.lt.s32.totalorder (!%p144_p2), %s1249_s13, 1  ;;  %p176_p4 = scmp.ge.s32.totalorder (!%p144_p2), %s1249_s13, 1 }
   0x6   : > { %147 = sbr.rel (%p144_p2) target bundleno = 287 (0x11f), region = 32 }
   0xb   : > { %v184_v0 = vlaneseq  ;;  %s1255_s14 = scalar_select %p166_p3, %s1249_s13, 1  ;;  %v1221_v12 = vmov 1.0   ;;  %v1222_v13 = vmov 0.0  }
   0xc   : > { %s177_s23 = scalar_select %p176_p4, 1, 0 }
   0xd   : > { %v1257_v1 = vshrl.u32 %v184_v0, 7  ;;  %s171_s17 = scalar_lea.vmem %s2243_s2, %s1255_s14  ;;  %s168_s20 = scalar_lea.vmem %s2242_s1, %s1255_s14 }
   0xe   : > { %v1275_v6 = vld [vmem:[%s171_s17] ss:$0 sm:$0xff]  ;;  %s174_s28 = scalar_lea.vmem %s2244_s3, %s1255_s14 }
   0xf   : > { %v1264_v2 = vadd.s32 120, %v1257_v1  ;;  %v1267_v3 = vadd.s32 112, %v1257_v1  ;;  %v1270_v4 = vadd.s32 104, %v1257_v1  ;;  %v1273_v5 = vadd.s32 96, %v1257_v1 }
  0x10   : > { %v1278_v7 = vadd.s32 88, %v1257_v1  ;;  %v1281_v8 = vadd.s32 80, %v1257_v1  ;;  %v1288_v9 = vadd.s32 72, %v1257_v1  ;;  %v1291_v10 = vadd.s32 64, %v1257_v1 }
  0x11   : > { %v1294_v11 = vadd.s32 56, %v1257_v1  ;;  %vm268_vm0 = vcmp.eq.s32.totalorder %v1264_v2, %v1275_v6  ;;  %vm267_vm1 = vcmp.eq.s32.totalorder %v1267_v3, %v1275_v6  ;;  %vm266_vm2 = vcmp.eq.s32.totalorder %v1270_v4, %v1275_v6 }
  0x12   : > { %vm265_vm3 = vcmp.eq.s32.totalorder %v1273_v5, %v1275_v6  ;;  %1098 = vmatpush.msk.msra.mxu0 %vm268_vm0, %v1221_v12  ;;  %v1097_v14 = vsel %vm268_vm0, 1.0, %v1222_v13  ;;  %v1096_v15 = vsel %vm267_vm1, 1.0, %v1222_v13  ;;  %1114 = vmatpush.msk.msra.mxu3 %vm268_vm0, %v1221_v12  ;;  %vm264_vm4 = vcmp.eq.s32.totalorder %v1278_v7, %v1275_v6 }
  0x13   : > { %v1095_v16 = vsel %vm266_vm2, 1.0, %v1222_v13  ;;  %v1326_v17 = vsub.f32 %v1097_v14, %v1097_v14  ;;  %v1328_v18 = vsub.f32 %v1096_v15, %v1096_v15  ;;  %vm263_vm5 = vcmp.eq.s32.totalorder %v1281_v8, %v1275_v6 }
  0x14   : > { %v1330_v19 = vsub.f32 %v1095_v16, %v1095_v16  ;;  %1099 = vmatpush.msk.msra.mxu0 %vm267_vm1, %v1221_v12  ;;  %1115 = vmatpush.msk.msra.mxu3 %vm267_vm1, %v1221_v12  ;;  %v1094_v20 = vsel %vm265_vm3, 1.0, %v1222_v13  ;;  %vm2266_vm6 = vcmp.eq.s32.totalorder %v1288_v9, %v1275_v6  ;;  %v1093_v21 = vsel %vm264_vm4, 1.0, %v1222_v13 }
  0x15   : > { %v1353_v22 = vadd.s32 48, %v1257_v1  ;;  %448 = vmatpush.msra.mxu2 %v1326_v17  ;;  %v347_v23 = vand.u32 4294901760, %v1326_v17  ;;  %v353_v24 = vand.u32 4294901760, %v1328_v18  ;;  %v1358_v25 = vsub.f32 %v1094_v20, %v1094_v20 }
  0x16   : > { %v359_v26 = vand.u32 4294901760, %v1330_v19  ;;  %1100 = vmatpush.msk.msra.mxu0 %vm266_vm2, %v1221_v12  ;;  %1116 = vmatpush.msk.msra.mxu3 %vm266_vm2, %v1221_v12  ;;  %v1369_v27 = vsub.f32 %v1093_v21, %v1093_v21  ;;  %vm2255_vm7 = vcmp.eq.s32.totalorder %v1291_v10, %v1275_v6  ;;  %v1092_v28 = vsel %vm263_vm5, 1.0, %v1222_v13 }
  0x17   : > { %v1091_v29 = vsel %vm2266_vm6, 1.0, %v1222_v13  ;;  %451 = vmatpush.msra.mxu2 %v1328_v18  ;;  %v348_v30 = vsub.f32 %v1326_v17, %v347_v23  ;;  %v354_v31 = vsub.f32 %v1328_v18, %v353_v24  ;;  %v365_v33 = vand.u32 4294901760, %v1358_v25 }
  0x18   : > { %v360_v32 = vsub.f32 %v1330_v19, %v359_v26  ;;  %1101 = vmatpush.msk.msra.mxu0 %vm265_vm3, %v1221_v12  ;;  %1117 = vmatpush.msk.msra.mxu3 %vm265_vm3, %v1221_v12  ;;  %v1400_v34 = vsub.f32 %v1092_v28, %v1092_v28  ;;  %vm2248_vm8 = vcmp.eq.s32.totalorder %v1294_v11, %v1275_v6  ;;  %v371_v35 = vand.u32 4294901760, %v1369_v27 }
  0x19   : > { %v1405_v36 = vsub.f32 %v1091_v29, %v1091_v29  ;;  %v349_v37 = vand.u32 4294901760, %v348_v30  ;;  %454 = vmatpush.msra.mxu2 %v1330_v19  ;;  %v355_v38 = vand.u32 4294901760, %v354_v31  ;;  %v366_v39 = vsub.f32 %v1358_v25, %v365_v33 }
  0x1a   : > { %vm2245_vm9 = vcmp.eq.s32.totalorder %v1353_v22, %v1275_v6  ;;  %1102 = vmatpush.msk.msra.mxu0 %vm264_vm4, %v1221_v12  ;;  %1118 = vmatpush.msk.msra.mxu3 %vm264_vm4, %v1221_v12  ;;  %v372_v40 = vsub.f32 %v1369_v27, %v371_v35  ;;  %v377_v41 = vand.u32 4294901760, %v1400_v34  ;;  %v1090_v42 = vsel %vm2255_vm7, 1.0, %v1222_v13 }
  0x1b   : > { %v1430_v43 = vadd.s32 40, %v1257_v1  ;;  %350 = vmatpush.msra.mxu1 %v349_v37  ;;  %457 = vmatpush.msra.mxu2 %v1358_v25  ;;  %v361_v44 = vand.u32 4294901760, %v360_v32  ;;  %v1433_v45 = vsub.f32 %v1090_v42, %v1090_v42  ;;  %v383_v46 = vand.u32 4294901760, %v1405_v36  ;;  %v1548_v32 = vld [vmem:[%s168_s20] ss:$0 sm:$0xff] }
  0x1c   : > { %v1089_v47 = vsel %vm2248_vm8, 1.0, %v1222_v13  ;;  %1103 = vmatpush.msk.msra.mxu0 %vm263_vm5, %v1221_v12  ;;  %v367_v48 = vand.u32 4294901760, %v366_v39  ;;  %1119 = vmatpush.msk.msra.mxu3 %vm263_vm5, %v1221_v12  ;;  %v378_v49 = vsub.f32 %v1400_v34, %v377_v41  ;;  %v1460_v52 = vadd.s32 32, %v1257_v1 }
  0x1d   : > { %vm2246_vm10 = vcmp.eq.s32.totalorder %v1430_v43, %v1275_v6  ;;  %v1453_v50 = vsub.f32 %v1089_v47, %v1089_v47  ;;  %356 = vmatpush.msra.mxu1 %v355_v38  ;;  %460 = vmatpush.msra.mxu2 %v1369_v27  ;;  %v384_v51 = vsub.f32 %v1405_v36, %v383_v46  ;;  %v2263_v53 = vand.u32 4294901760, %v1433_v45 }
  0x1e   : > { %v1088_v54 = vsel %vm2245_vm9, 1.0, %v1222_v13  ;;  %1104 = vmatpush.msk.msra.mxu0 %vm2266_vm6, %v1221_v12  ;;  %v373_v55 = vand.u32 4294901760, %v372_v40  ;;  %1120 = vmatpush.msk.msra.mxu3 %vm2266_vm6, %v1221_v12  ;;  %v1478_v57 = vadd.s32 24, %v1257_v1  ;;  %v379_v59 = vand.u32 4294901760, %v378_v49 }
  0x1f   : > { %v1475_v56 = vsub.f32 %v1088_v54, %v1088_v54  ;;  %v2262_v58 = vand.u32 4294901760, %v1453_v50  ;;  %362 = vmatpush.msra.mxu1 %v361_v44  ;;  %463 = vmatpush.msra.mxu2 %v1400_v34  ;;  %vm2247_vm11 = vcmp.eq.s32.totalorder %v1460_v52, %v1275_v6  ;;  %v390_v60 = vsub.f32 %v1433_v45, %v2263_v53 }
  0x20   : > { %v1087_v61 = vsel %vm2246_vm10, 1.0, %v1222_v13  ;;  %1105 = vmatpush.msk.msra.mxu0 %vm2255_vm7, %v1221_v12  ;;  %v385_v62 = vand.u32 4294901760, %v384_v51  ;;  %1121 = vmatpush.msk.msra.mxu3 %vm2255_vm7, %v1221_v12  ;;  %vm2250_vm12 = vcmp.eq.s32.totalorder %v1478_v57, %v1275_v6  ;;  %v1504_v0 = vadd.s32 16, %v1257_v1 }
  0x21   : > { %v1501_v63 = vsub.f32 %v1087_v61, %v1087_v61  ;;  %368 = vmatpush.msra.mxu1 %v367_v48  ;;  %466 = vmatpush.msra.mxu2 %v1405_v36  ;;  %v396_v14 = vsub.f32 %v1453_v50, %v2262_v58  ;;  %v2261_v15 = vand.u32 4294901760, %v1475_v56  ;;  %v1086_v16 = vsel %vm2247_vm11, 1.0, %v1222_v13 }
  0x22   : > { %v1516_v20 = vadd.s32 8, %v1257_v1  ;;  %1106 = vmatpush.msk.msra.mxu0 %vm2248_vm8, %v1221_v12  ;;  %v391_v21 = vand.u32 4294901760, %v390_v60  ;;  %1122 = vmatpush.msk.msra.mxu3 %vm2248_vm8, %v1221_v12  ;;  %vm2254_vm13 = vcmp.eq.s32.totalorder %v1504_v0, %v1275_v6  ;;  %v1528_v28 = vsub.f32 %v1086_v16, %v1086_v16 }
  0x23   : > { %v2260_v29 = vand.u32 4294901760, %v1501_v63  ;;  %374 = vmatpush.msra.mxu1 %v373_v55  ;;  %469 = vmatpush.msra.mxu2 %v1433_v45  ;;  %v402_v30 = vsub.f32 %v1475_v56, %v2261_v15  ;;  %v1085_v31 = vsel %vm2250_vm12, 1.0, %v1222_v13  ;;  %vm2264_vm15 = vcmp.eq.s32.totalorder %v1257_v1, %v1275_v6 }
  0x24   : > { %vm2258_vm14 = vcmp.eq.s32.totalorder %v1516_v20, %v1275_v6  ;;  %1107 = vmatpush.msk.msra.mxu0 %vm2245_vm9, %v1221_v12  ;;  %1123 = vmatpush.msk.msra.mxu3 %vm2245_vm9, %v1221_v12  ;;  %v1563_v38 = vsub.f32 %v1085_v31, %v1085_v31  ;;  %v2257_v39 = vand.u32 4294901760, %v1528_v28  ;;  %v1084_v40 = vsel %vm2254_vm13, 1.0, %v1222_v13 }
  0x25   : > { %v1561_v37 = vsub.f32 %v1501_v63, %v2260_v29  ;;  %380 = vmatpush.msra.mxu1 %v379_v59  ;;  %472 = vmatpush.msra.mxu2 %v1453_v50  ;;  %v397_v42 = vand.u32 4294901760, %v396_v14  ;;  %v1571_v44 = vsub.f32 %v1084_v40, %v1084_v40  ;;  %v1083_v47 = vsel %vm2258_vm14, 1.0, %v1222_v13 }
  0x26   : > { %v1082_v48 = vsel %vm2264_vm15, 1.0, %v1222_v13  ;;  %1108 = vmatpush.msk.msra.mxu0 %vm2246_vm10, %v1221_v12  ;;  %v403_v49 = vand.u32 4294901760, %v402_v30  ;;  %1124 = vmatpush.msk.msra.mxu3 %vm2246_vm10, %v1221_v12  ;;  %v1592_v51 = vsub.f32 %v1528_v28, %v2257_v39  ;;  %v2253_v54 = vand.u32 4294901760, %v1563_v38 }
  0x27   : > { %v1595_v55 = vsub.f32 %v1083_v47, %v1083_v47  ;;  %386 = vmatpush.msra.mxu1 %v385_v62  ;;  %475 = vmatpush.msra.mxu2 %v1475_v56  ;;  %v2249_v59 = vand.u32 4294901760, %v1571_v44  ;;  %v1599_v60 = vsub.f32 %v1082_v48, %v1082_v48  ;;  %vm2270_vm9 = vcmp.eq.s32.totalorder %v1264_v2, %v1548_v32 }
  0x28   : > { %vm2269_vm10 = vcmp.eq.s32.totalorder %v1267_v3, %v1548_v32  ;;  %1109 = vmatpush.msk.msra.mxu0 %vm2247_vm11, %v1221_v12  ;;  %v409_v61 = vand.u32 4294901760, %v1561_v37  ;;  %1125 = vmatpush.msk.msra.mxu3 %vm2247_vm11, %v1221_v12  ;;  %v1617_v62 = vsub.f32 %v1563_v38, %v2253_v54  ;;  %v1081_v16 = vsel %vm2270_vm9, 1.0, %v1222_v13 }
  0x29   : > { %v2252_v14 = vand.u32 4294901760, %v1595_v55  ;;  %392 = vmatpush.msra.mxu1 %v391_v21  ;;  %478 = vmatpush.msra.mxu2 %v1501_v63  ;;  %v1628_v30 = vsub.f32 %v1571_v44, %v2249_v59  ;;  %v1630_v31 = vsub.f32 %v1081_v16, %v1081_v16  ;;  %v2251_v37 = vand.u32 4294901760, %v1599_v60 }
  0x2a   : > { %vm216_vm11 = vcmp.eq.s32.totalorder %v1270_v4, %v1548_v32  ;;  %1110 = vmatpush.msk.msra.mxu0 %vm2250_vm12, %v1221_v12  ;;  %v415_v21 = vand.u32 4294901760, %v1592_v51  ;;  %1126 = vmatpush.msk.msra.mxu3 %vm2250_vm12, %v1221_v12  ;;  %v1080_v47 = vsel %vm2269_vm10, 1.0, %v1222_v13  ;;  %vm215_vm8 = vcmp.eq.s32.totalorder %v1273_v5, %v1548_v32 }
  0x2b   : > { %v1647_v40 = vsub.f32 %v1595_v55, %v2252_v14  ;;  %398 = vmatpush.msra.mxu1 %v397_v42  ;;  %481 = vmatpush.msra.mxu2 %v1528_v28  ;;  %v421_v48 = vand.u32 4294901760, %v1617_v62  ;;  %v427_v51 = vand.u32 4294901760, %v1628_v30  ;;  %v2256_v16 = vand.u32 4294901760, %v1630_v31 }
  0x2c   : > { %v1659_v59 = vsub.f32 %v1080_v47, %v1080_v47  ;;  %1111 = vmatpush.msk.msra.mxu0 %vm2254_vm13, %v1221_v12  ;;  %1127 = vmatpush.msk.msra.mxu3 %vm2254_vm13, %v1221_v12  ;;  %v1672_v42 = vsub.f32 %v1599_v60, %v2251_v37  ;;  %v1079_v62 = vsel %vm216_vm11, 1.0, %v1222_v13  ;;  %vm214_vm12 = vcmp.eq.s32.totalorder %v1278_v7, %v1548_v32 }
  0x2d   : > { %v1078_v30 = vsel %vm215_vm8, 1.0, %v1222_v13  ;;  %404 = vmatpush.msra.mxu1 %v403_v49  ;;  %484 = vmatpush.msra.mxu2 %v1563_v38  ;;  %v433_v47 = vand.u32 4294901760, %v1647_v40  ;;  %v691_v37 = vsub.f32 %v1630_v31, %v2256_v16  ;;  %v1690_v54 = vsub.f32 %v1079_v62, %v1079_v62 }
  0x2e   : > { %v2259_v14 = vand.u32 4294901760, %v1659_v59  ;;  %1112 = vmatpush.msk.msra.mxu0 %vm2258_vm14, %v1221_v12  ;;  %1128 = vmatpush.msk.msra.mxu3 %vm2258_vm14, %v1221_v12  ;;  %v1700_v49 = vsub.f32 %v1078_v30, %v1078_v30  ;;  %vm213_vm13 = vcmp.eq.s32.totalorder %v1281_v8, %v1548_v32  ;;  %v1077_v40 = vsel %vm214_vm12, 1.0, %v1222_v13 }
  0x2f   : > { %vm212_vm7 = vcmp.eq.s32.totalorder %v1288_v9, %v1548_v32  ;;  %410 = vmatpush.msra.mxu1 %v409_v61  ;;  %487 = vmatpush.msra.mxu2 %v1571_v44  ;;  %v692_v62 = vand.u32 4294901760, %v691_v37  ;;  %v702_v16 = vand.u32 4294901760, %v1690_v54  ;;  %v1715_v39 = vsub.f32 %v1077_v40, %v1077_v40 }
  0x30   : > { %v697_v30 = vsub.f32 %v1659_v59, %v2259_v14  ;;  %1113 = vmatpush.msk.msra.mxu0 %vm2264_vm15, %v1221_v12  ;;  %1129 = vmatpush.msk.msra.mxu3 %vm2264_vm15, %v1221_v12  ;;  %v2265_v61 = vand.u32 4294901760, %v1700_v49  ;;  %v1076_v37 = vsel %vm213_vm13, 1.0, %v1222_v13  ;;  %vm2268_vm14 = vcmp.eq.s32.totalorder %v1291_v10, %v1548_v32 }
  0x31   : > { %v1075_v40 = vsel %vm212_vm7, 1.0, %v1222_v13  ;;  %416 = vmatpush.msra.mxu1 %v415_v21  ;;  %v703_v29 = vsub.f32 %v1690_v54, %v702_v16  ;;  %v714_v15 = vand.u32 4294901760, %v1715_v39  ;;  %v1742_v58 = vsub.f32 %v1076_v37, %v1076_v37  ;;  %490 = vmatpush.msra.mxu2 %v1595_v55 }
  0x32   : > { %542 = vmatpush.msrb.mxu0 %v347_v23  ;;  %v698_v14 = vand.u32 4294901760, %v697_v30  ;;  %693 = vmatpush.msrb.mxu3 %v692_v62  ;;  %v709_v53 = vsub.f32 %v1700_v49, %v2265_v61  ;;  %v1748_v21 = vsub.f32 %v1075_v40, %v1075_v40  ;;  %vm2267_vm15 = vcmp.eq.s32.totalorder %v1294_v11, %v1548_v32 }
  0x33   : > { %v1074_v17 = vsel %vm2268_vm14, 1.0, %v1222_v13  ;;  %422 = vmatpush.msra.mxu1 %v421_v48  ;;  %v704_v23 = vand.u32 4294901760, %v703_v29  ;;  %v715_v62 = vsub.f32 %v1715_v39, %v714_v15  ;;  %v720_v30 = vand.u32 4294901760, %v1742_v58  ;;  %493 = vmatpush.msra.mxu2 %v1599_v60 }
  0x34   : > { %546 = vmatpush.msrb.mxu0 %v353_v24  ;;  %v1763_v37 = vsub.f32 %v1074_v17, %v1074_v17  ;;  %699 = vmatpush.msrb.mxu3 %v698_v14  ;;  %v710_v40 = vand.u32 4294901760, %v709_v53  ;;  %v726_v61 = vand.u32 4294901760, %v1748_v21  ;;  %vm209_vm6 = vcmp.eq.s32.totalorder %v1353_v22, %v1548_v32  ;;  %v175_v17 = vld [vmem:[%s2241_s0] sm:$0xf] }
  0x35   : > { %v1073_v18 = vsel %vm2267_vm15, 1.0, %v1222_v13  ;;  %428 = vmatpush.msra.mxu1 %v427_v51  ;;  %v439_v24 = vand.u32 4294901760, %v1672_v42  ;;  %v721_v53 = vsub.f32 %v1742_v58, %v720_v30  ;;  %1146 = vmatpush.msk.msrb.mxu2 %vm2270_vm9, %v1221_v12  ;;  %vm208_vm15 = vcmp.eq.s32.totalorder %v1430_v43, %v1548_v32 }
  0x36   : > { %550 = vmatpush.msrb.mxu0 %v359_v26  ;;  %v732_v29 = vand.u32 4294901760, %v1763_v37  ;;  %v1780_v14 = vsub.f32 %v1073_v18, %v1073_v18  ;;  %705 = vmatpush.msrb.mxu3 %v704_v23  ;;  %v727_v19 = vsub.f32 %v1748_v21, %v726_v61  ;;  %v1072_v26 = vsel %vm209_vm6, 1.0, %v1222_v13 }
  0x37   : > { %vm207_vm14 = vcmp.eq.s32.totalorder %v1460_v52, %v1548_v32  ;;  %434 = vmatpush.msra.mxu1 %v433_v47  ;;  %v716_v48 = vand.u32 4294901760, %v715_v62  ;;  %v1802_v42 = vsub.f32 %v1072_v26, %v1072_v26  ;;  %1147 = vmatpush.msk.msrb.mxu2 %vm2269_vm10, %v1221_v12  ;;  %v722_v23 = vand.u32 4294901760, %v721_v53 }
  0x38   : > { %554 = vmatpush.msrb.mxu0 %v365_v33  ;;  %v738_v51 = vand.u32 4294901760, %v1780_v14  ;;  %711 = vmatpush.msrb.mxu3 %v710_v40  ;;  %v1071_v25 = vsel %vm208_vm15, 1.0, %v1222_v13  ;;  %v1070_v33 = vsel %vm207_vm14, 1.0, %v1222_v13  ;;  %v733_v47 = vsub.f32 %v1763_v37, %v732_v29 }
  0x39   : > { %440 = vmatpush.msra.mxu1 %v439_v24  ;;  %v744_v62 = vand.u32 4294901760, %v1802_v42  ;;  %v1825_v40 = vsub.f32 %v1071_v25, %v1071_v25  ;;  %vm206_vm10 = vcmp.eq.s32.totalorder %v1478_v57, %v1548_v32  ;;  %1148 = vmatpush.msk.msrb.mxu2 %vm216_vm11, %v1221_v12  ;;  %v728_v27 = vand.u32 4294901760, %v727_v19 }
  0x3a   : > { %558 = vmatpush.msrb.mxu0 %v371_v35  ;;  %v1837_v35 = vsub.f32 %v1070_v33, %v1070_v33  ;;  %v178_v18 = vstv %s177_s23  ;;  %v181_v24 = vrot.slane %v175_v17, 6  ;;  %717 = vmatpush.msrb.mxu3 %v716_v48  ;;  %v739_v53 = vsub.f32 %v1780_v14, %v738_v51 }
  0x3b   : > { %1130 = vmatpush.msk.msrb.mxu1 %vm268_vm0, %v1221_v12  ;;  %v2271_v26 = vand.u32 4294901760, %v1825_v40  ;;  %vm179_vm0 = vcmp.eq.s32.totalorder %v178_v18, 1  ;;  %vm205_vm9 = vcmp.eq.s32.totalorder %v1504_v0, %v1548_v32  ;;  %1149 = vmatpush.msk.msrb.mxu2 %vm215_vm8, %v1221_v12  ;;  %v745_v34 = vsub.f32 %v1802_v42, %v744_v62 }
  0x3c   : > { %562 = vmatpush.msrb.mxu0 %v377_v41  ;;  %v1858_v41 = vsel %vm179_vm0, %v175_v17, %v181_v24  ;;  %v1069_v19 = vsel %vm206_vm10, 1.0, %v1222_v13  ;;  %723 = vmatpush.msrb.mxu3 %v722_v23  ;;  %v734_v48 = vand.u32 4294901760, %v733_v47  ;;  %v756_v25 = vand.u32 4294901760, %v1837_v35 }
  0x3d   : > { %1131 = vmatpush.msk.msrb.mxu1 %vm267_vm1, %v1221_v12  ;;  %v302_v33 = vrot.slane %v1858_v41, 3  ;;  %vm204_vm1 = vcmp.eq.s32.totalorder %v1516_v20, %v1548_v32  ;;  %1150 = vmatpush.msk.msrb.mxu2 %vm214_vm12, %v1221_v12  ;;  %v1878_v36 = vsub.f32 %v1069_v19, %v1069_v19  ;;  %v2272_v17 = vand.u32 4294901760, %v1433_v45 }
  0x3e   : > { %566 = vmatpush.msrb.mxu0 %v383_v46  ;;  %v1068_v46 = vsel %vm205_vm9, 1.0, %v1222_v13  ;;  %729 = vmatpush.msrb.mxu3 %v728_v27  ;;  %v740_v23 = vand.u32 4294901760, %v739_v53  ;;  %v751_v47 = vsub.f32 %v1825_v40, %v2271_v26  ;;  %v746_v45 = vand.u32 4294901760, %v745_v34 }
  0x3f   : > { %1132 = vmatpush.msk.msrb.mxu1 %vm266_vm2, %v1221_v12  ;;  %v1889_v18 = vand.u32 4294901760, %v302_v33  ;;  %v1891_v24 = vsub.f32 %v1068_v46, %v1068_v46  ;;  %1151 = vmatpush.msk.msrb.mxu2 %vm213_vm13, %v1221_v12  ;;  %v762_v27 = vand.u32 4294901760, %v1878_v36  ;;  %v1067_v53 = vsel %vm204_vm1, 1.0, %v1222_v13 }
  0x40   : > { %570 = vmatpush.msrb.mxu0 %v2272_v17  ;;  %v2273_v19 = vand.u32 4294901760, %v1453_v50  ;;  %735 = vmatpush.msrb.mxu3 %v734_v48  ;;  %v757_v46 = vsub.f32 %v1837_v35, %v756_v25  ;;  %vm203_vm2 = vcmp.eq.s32.totalorder %v1257_v1, %v1548_v32  ;;  %v1923_v50 = vsub.f32 %v1067_v53, %v1067_v53 }
  0x41   : > { %1133 = vmatpush.msk.msrb.mxu1 %vm265_vm3, %v1221_v12  ;;  %v337_v17 = vsub.f32 %v302_v33, %v1889_v18  ;;  %v768_v26 = vand.u32 4294901760, %v1891_v24  ;;  %1152 = vmatpush.msk.msrb.mxu2 %vm212_vm7, %v1221_v12  ;;  %v2274_v34 = vand.u32 4294901760, %v1475_v56  ;;  %v752_v48 = vand.u32 4294901760, %v751_v47 }
  0x42   : > { %574 = vmatpush.msrb.mxu0 %v2273_v19  ;;  %741 = vmatpush.msrb.mxu3 %v740_v23  ;;  %v763_v33 = vsub.f32 %v1878_v36, %v762_v27  ;;  %vm2275_vm3 = vcmp.eq.s32.totalorder %v1291_v10, %v1548_v32  ;;  %v645_v56 = vrot.slane %v1858_v41, 2  ;;  %v1066_v23 = vsel %vm203_vm2, 1.0, %v1222_v13 }
  0x43   : > { %1134 = vmatpush.msk.msrb.mxu1 %vm264_vm4, %v1221_v12  ;;  %1153 = vmatpush.msk.msrb.mxu2 %vm2275_vm3, %v1221_v12  ;;  %v338_v53 = vand.u32 4294901760, %v337_v17  ;;  %v2276_v47 = vand.u32 4294901760, %v1501_v63  ;;  %v758_v19 = vand.u32 4294901760, %v757_v46  ;;  %vm2277_vm4 = vcmp.eq.s32.totalorder %v1288_v9, %v1275_v6 }
  0x44   : > { %578 = vmatpush.msrb.mxu0 %v2274_v34  ;;  %747 = vmatpush.msrb.mxu3 %v746_v45  ;;  %v769_v34 = vsub.f32 %v1891_v24, %v768_v26  ;;  %v774_v13 = vand.u32 4294901760, %v1923_v50  ;;  %v2279_v63 = vand.u32 4294901760, %v1528_v28  ;;  %v764_v41 = vand.u32 4294901760, %v763_v33 }
  0x45   : > { %1135 = vmatpush.msk.msrb.mxu1 %vm263_vm5, %v1221_v12  ;;  %vm2278_vm5 = vcmp.eq.s32.totalorder %v1294_v11, %v1548_v32  ;;  %v1959_v45 = vsub.f32 %v1066_v23, %v1066_v23  ;;  %vm2280_vm0 = vcmp.eq.s32.totalorder %v1291_v10, %v1275_v6  ;;  %v339_v46 = vsub.f32 %v337_v17, %v338_v53 }
  0x46   : > { %582 = vmatpush.msrb.mxu0 %v2276_v47  ;;  %1154 = vmatpush.msk.msrb.mxu2 %vm2278_vm5, %v1221_v12  ;;  %v1969_v47 = vand.u32 4294901760, %v645_v56  ;;  %v2281_v28 = vand.u32 4294901760, %v1563_v38  ;;  %vm2282_vm3 = vcmp.eq.s32.totalorder %v1294_v11, %v1275_v6  ;;  %v775_v33 = vsub.f32 %v1923_v50, %v774_v13 }
  0x47   : > { %1136 = vmatpush.msk.msrb.mxu1 %vm2277_vm4, %v1221_v12  ;;  %753 = vmatpush.msrb.mxu3 %v752_v48  ;;  %v770_v48 = vand.u32 4294901760, %v769_v34  ;;  %v2283_v23 = vand.u32 4294901760, %v1571_v44  ;;  %v780_v38 = vand.u32 4294901760, %v1959_v45  ;;  %vm2284_vm4 = vcmp.eq.s32.totalorder %v1353_v22, %v1275_v6 }
  0x48   : > { %586 = vmatpush.msrb.mxu0 %v2279_v63  ;;  %1155 = vmatpush.msk.msrb.mxu2 %vm209_vm6, %v1221_v12  ;;  %v1996_v34 = vsub.f32 %v645_v56, %v1969_v47  ;;  %v2285_v44 = vand.u32 4294901760, %v1595_v55  ;;  %vm2286_vm5 = vcmp.eq.s32.totalorder %v1430_v43, %v1275_v6  ;;  %v776_v63 = vand.u32 4294901760, %v775_v33 }
  0x49   : > { %1137 = vmatpush.msk.msrb.mxu1 %vm2280_vm0, %v1221_v12  ;;  %759 = vmatpush.msrb.mxu3 %v758_v19  ;;  %v340_v19 = vand.u32 4294901760, %v339_v46  ;;  %v781_v55 = vsub.f32 %v1959_v45, %v780_v38  ;;  %vm2288_vm0 = vcmp.eq.s32.totalorder %v1460_v52, %v1275_v6  ;;  %v2291_v46 = vand.u32 4294901760, %v1630_v31 }
  0x4a   : > { %590 = vmatpush.msrb.mxu0 %v2281_v28  ;;  %1156 = vmatpush.msk.msrb.mxu2 %vm208_vm15, %v1221_v12  ;;  %v681_v56 = vand.u32 4294901760, %v1996_v34 }
  0x4b   : > { %1138 = vmatpush.msk.msrb.mxu1 %vm2282_vm3, %v1221_v12  ;;  %765 = vmatpush.msrb.mxu3 %v764_v41  ;;  %v2287_v41 = vand.u32 4294901760, %v1599_v60  ;;  %vm2289_vm3 = vcmp.eq.s32.totalorder %v1478_v57, %v1275_v6  ;;  %v782_v60 = vand.u32 4294901760, %v781_v55 }
  0x4c   : > { %594 = vmatpush.msrb.mxu0 %v2283_v23  ;;  %1157 = vmatpush.msk.msrb.mxu2 %vm207_vm14, %v1221_v12 }
  0x4d   : > { %1139 = vmatpush.msk.msrb.mxu1 %vm2284_vm4, %v1221_v12  ;;  %771 = vmatpush.msrb.mxu3 %v770_v48  ;;  %vm2290_vm4 = vcmp.eq.s32.totalorder %v1504_v0, %v1275_v6 }
  0x4e   : > { %598 = vmatpush.msrb.mxu0 %v2285_v44  ;;  %1158 = vmatpush.msk.msrb.mxu2 %vm206_vm10, %v1221_v12 }
  0x4f   : > { %1140 = vmatpush.msk.msrb.mxu1 %vm2286_vm5, %v1221_v12  ;;  %496 = vmatmul.f32.vlgmr.msra.gmra.mxu2 %v337_v17  ;;  %v682_v17 = vsub.f32 %v1996_v34, %v681_v56  ;;  %vm2292_vm5 = vcmp.eq.s32.totalorder %v1516_v20, %v1275_v6 }
  0x50   : > { %602 = vmatpush.msrb.mxu0 %v2287_v41  ;;  %1159 = vmatpush.msk.msrb.mxu2 %vm205_vm9, %v1221_v12 }
  0x51   : > { %341 = vmatmul.f32.vlgmr.msra.gmra.mxu0 %v340_v19  ;;  %1141 = vmatpush.msk.msrb.mxu1 %vm2288_vm0, %v1221_v12  ;;  %v683_v28 = vand.u32 4294901760, %v682_v17  ;;  %vm2294_vm0 = vcmp.eq.s32.totalorder %v1264_v2, %v1548_v32  ;;  %v2303_v2 = vand.u32 4294901760, %v1825_v40 }
  0x52   : > { %791 = vmatpush.msra.mxu0 %v1630_v31  ;;  %777 = vmatpush.msrb.mxu3 %v776_v63 }
  0x53   : > { %1142 = vmatpush.msk.msrb.mxu1 %vm2289_vm3, %v1221_v12  ;;  %1160 = vmatpush.msk.msrb.mxu2 %vm204_vm1, %v1221_v12  ;;  %vm2295_vm3 = vcmp.eq.s32.totalorder %v1257_v1, %v1275_v6  ;;  %v2299_v6 = vand.u32 4294901760, %v1700_v49 }
  0x54   : > { %794 = vmatpush.msra.mxu0 %v1659_v59  ;;  %535 = vmatmul.f32.vlgmr.msra.gmra.mxu3 %v338_v53  ;;  %v2293_v53 = vand.u32 4294901760, %v1659_v59 }
  0x55   : > { %1143 = vmatpush.msk.msrb.mxu1 %vm2290_vm4, %v1221_v12  ;;  %1161 = vmatpush.msk.msrb.mxu2 %vm203_vm2, %v1221_v12  ;;  %vm2296_vm4 = vmmov %vm2294_vm0 }
  0x56   : > { %797 = vmatpush.msra.mxu0 %v1690_v54  ;;  %783 = vmatpush.msrb.mxu3 %v782_v60 }
  0x57   : > { %885 = vmatpush.msra.mxu2 %v2291_v46  ;;  %1144 = vmatpush.msk.msrb.mxu1 %vm2292_vm5, %v1221_v12  ;;  %vm2297_vm5 = vcmp.eq.s32.totalorder %v1267_v3, %v1548_v32 }
  0x58   : > { %800 = vmatpush.msra.mxu0 %v1700_v49  ;;  %442 = vmatmul.f32.vlgmr.msra.gmra.mxu1 %v1889_v18 }
  0x59   : > { %889 = vmatpush.msra.mxu2 %v2293_v53  ;;  %1178 = vmatpush.msk.msra.mxu3 %vm2294_vm0, %v1221_v12  ;;  %vm2298_vm0 = vmmov %vm2297_vm5 }
  0x5a   : > { %1145 = vmatpush.msk.msrb.mxu1 %vm2295_vm3, %v1221_v12  ;;  %803 = vmatpush.msra.mxu0 %v1715_v39 }
  0x5b   : > { %893 = vmatpush.msra.mxu2 %v702_v16  ;;  %1179 = vmatpush.msk.msra.mxu3 %vm2297_vm5, %v1221_v12 }
  0x5c   : > { %1162 = vmatpush.msk.msra.mxu1 %vm2296_vm4, %v1221_v12  ;;  %806 = vmatpush.msra.mxu0 %v1742_v58 }
  0x5d   : > { %684 = vmatmul.f32.vlgmr.msrb.gmra.mxu2 %v683_v28  ;;  %1180 = vmatpush.msk.msra.mxu3 %vm216_vm11, %v1221_v12 }
  0x5e   : > { %1163 = vmatpush.msk.msra.mxu1 %vm2298_vm0, %v1221_v12  ;;  %897 = vmatpush.msra.mxu2 %v2299_v6 }
  0x5f   : > { %809 = vmatpush.msra.mxu0 %v1748_v21  ;;  %785 = vmatmul.f32.vlgmr.msrb.gmra.mxu3 %v1969_v47 }
  0x60   : > { %604 = vmatmul.f32.vlgmr.msrb.gmra.mxu0 %v1889_v18  ;;  %1164 = vmatpush.msk.msra.mxu1 %vm216_vm11, %v1221_v12 }
  0x61   : > { %901 = vmatpush.msra.mxu2 %v714_v15  ;;  %1181 = vmatpush.msk.msra.mxu3 %vm215_vm8, %v1221_v12 }
  0x62   : > { %812 = vmatpush.msra.mxu0 %v1763_v37  ;;  %641 = vmatmul.f32.vlgmr.msrb.gmra.mxu1 %v1889_v18 }
  0x63   : > { %905 = vmatpush.msra.mxu2 %v720_v30  ;;  %1165 = vmatpush.msk.msra.mxu1 %vm215_vm8, %v1221_v12  ;;  %vm2300_vm8 = vcmp.eq.s32.totalorder %v1291_v10, %v1548_v32 }
  0x64   : > { %1182 = vmatpush.msk.msra.mxu3 %vm214_vm12, %v1221_v12  ;;  %815 = vmatpush.msra.mxu0 %v1780_v14  ;;  %vm2301_vm11 = vmmov %vm2300_vm8 }
  0x65   : > { %909 = vmatpush.msra.mxu2 %v726_v61  ;;  %1166 = vmatpush.msk.msra.mxu1 %vm214_vm12, %v1221_v12  ;;  %vm2302_vm12 = vcmp.eq.s32.totalorder %v1294_v11, %v1548_v32 }
  0x66   : > { %1183 = vmatpush.msk.msra.mxu3 %vm213_vm13, %v1221_v12  ;;  %818 = vmatpush.msra.mxu0 %v1802_v42 }
  0x67   : > { %913 = vmatpush.msra.mxu2 %v732_v29  ;;  %1167 = vmatpush.msk.msra.mxu1 %vm213_vm13, %v1221_v12 }
  0x68   : > { %1184 = vmatpush.msk.msra.mxu3 %vm212_vm7, %v1221_v12  ;;  %821 = vmatpush.msra.mxu0 %v1825_v40 }
  0x69   : > { %917 = vmatpush.msra.mxu2 %v738_v51  ;;  %1168 = vmatpush.msk.msra.mxu1 %vm212_vm7, %v1221_v12  ;;  %vm2304_vm7 = vmmov %vm2302_vm12 }
  0x6a   : > { %1185 = vmatpush.msk.msra.mxu3 %vm2300_vm8, %v1221_v12  ;;  %824 = vmatpush.msra.mxu0 %v1837_v35 }
  0x6b   : > { %921 = vmatpush.msra.mxu2 %v744_v62  ;;  %1169 = vmatpush.msk.msra.mxu1 %vm2301_vm11, %v1221_v12 }
  0x6c   : > { %1186 = vmatpush.msk.msra.mxu3 %vm2302_vm12, %v1221_v12  ;;  %827 = vmatpush.msra.mxu0 %v1878_v36 }
  0x6d   : > { %925 = vmatpush.msra.mxu2 %v2303_v2  ;;  %1170 = vmatpush.msk.msra.mxu1 %vm2304_vm7, %v1221_v12 }
  0x6e   : > { %1187 = vmatpush.msk.msra.mxu3 %vm209_vm6, %v1221_v12  ;;  %830 = vmatpush.msra.mxu0 %v1891_v24 }
  0x6f   : > { %929 = vmatpush.msra.mxu2 %v756_v25  ;;  %1171 = vmatpush.msk.msra.mxu1 %vm209_vm6, %v1221_v12 }
  0x70   : > { %1188 = vmatpush.msk.msra.mxu3 %vm208_vm15, %v1221_v12  ;;  %833 = vmatpush.msra.mxu0 %v1923_v50 }
  0x71   : > { %933 = vmatpush.msra.mxu2 %v762_v27  ;;  %1172 = vmatpush.msk.msra.mxu1 %vm208_vm15, %v1221_v12 }
  0x72   : > { %1189 = vmatpush.msk.msra.mxu3 %vm207_vm14, %v1221_v12  ;;  %836 = vmatpush.msra.mxu0 %v1959_v45 }
  0x73   : > { %937 = vmatpush.msra.mxu2 %v768_v26  ;;  %839 = vmatmul.f32.vlgmr.msra.gmra.mxu0 %v1996_v34 }
  0x74   : > { %1173 = vmatpush.msk.msra.mxu1 %vm207_vm14, %v1221_v12  ;;  %1190 = vmatpush.msk.msra.mxu3 %vm206_vm10, %v1221_v12 }
  0x75   : > { %941 = vmatpush.msra.mxu2 %v774_v13 }
  0x76   : > { %1174 = vmatpush.msk.msra.mxu1 %vm206_vm10, %v1221_v12  ;;  %1191 = vmatpush.msk.msra.mxu3 %vm205_vm9, %v1221_v12 }
  0x77   : > { %945 = vmatpush.msra.mxu2 %v780_v38 }
  0x78   : > { %1175 = vmatpush.msk.msra.mxu1 %vm205_vm9, %v1221_v12  ;;  %947 = vmatmul.f32.vlgmr.msra.gmra.mxu2 %v1969_v47 }
  0x79   : > { %1192 = vmatpush.msk.msra.mxu3 %vm204_vm1, %v1221_v12 }
  0x7a   : > { %1176 = vmatpush.msk.msra.mxu1 %vm204_vm1, %v1221_v12 }
  0x7b   : > { %1193 = vmatpush.msk.msra.mxu3 %vm203_vm2, %v1221_v12 }
  0x7c   : > { %984 = vmatmul.f32.vlgmr.msra.gmra.mxu3 %v1969_v47  ;;  %1177 = vmatpush.msk.msra.mxu1 %vm203_vm2, %v1221_v12 }
  0x7d   : > { %878 = vmatmul.f32.vlgmr.msra.gmra.mxu1 %v681_v56 }
  0xce   : > { %v342_v4 = vpop.f32.mrf.mxu0 }
  0xd2   : > { %v497_v7 = vpop.f32.mrf.mxu2 }
  0xd5   : > { %v443_v3 = vpop.f32.mrf.mxu1 }
  0xd6   : > { %v444_v5 = vadd.f32 %v443_v3, %v342_v4 }
  0xd7   : > { %v536_v9 = vpop.f32.mrf.mxu3 }
  0xd8   : > { %v498_v8 = vadd.f32 %v497_v7, %v444_v5 }
  0xda   : > { %v537_v10 = vadd.f32 %v536_v9, %v498_v8 }
  0xdd   : > { %v605_v11 = vpop.f32.mrf.mxu0 }
  0xde   : > { %v606_v22 = vadd.f32 %v605_v11, %v537_v10 }
  0xdf   : > { %v642_v43 = vpop.f32.mrf.mxu1 }
  0xe0   : > { %v643_v52 = vadd.f32 %v642_v43, %v606_v22  ;;  %v685_v57 = vpop.f32.mrf.mxu2 }
  0xe2   : > { %v686_v58 = vadd.f32 %v685_v57, %v643_v52  ;;  %v786_v0 = vpop.f32.mrf.mxu3 }
  0xe4   : > { %v787_v1 = vadd.f32 %v786_v0, %v686_v58 }
  0xf0   : > { %v840_v15 = vpop.f32.mrf.mxu0 }
  0xf1   : > { %v841_v12 = vadd.f32 %v840_v15, %v787_v1 }
  0xfa   : > { %v879_v20 = vpop.f32.mrf.mxu1 }
  0xfb   : > { %v880_v32 = vadd.f32 %v879_v20, %v841_v12  ;;  %v948_v39 = vpop.f32.mrf.mxu2 }
  0xfd   : > { %v949_v54 = vadd.f32 %v948_v39, %v880_v32 }
  0xff   : > { %v985_v59 = vpop.f32.mrf.mxu3 }
 0x100   : > { %v986_v31 = vadd.f32 %v985_v59, %v949_v54 }
 0x102   : > { %v1194_v16 = vmul.f32 -1.442695, %v986_v31 }
 0x104   : > { %1209 = vpow2.f32 %v1194_v16 }
 0x10a   : > { %v1210_v49 = vpop.eup %1209 }
 0x10b   : > { %v991_v61 = vadd.f32 1.0, %v1210_v49 }
 0x10d   : > { %1211 = vrcp.f32 %v991_v61  ;;  %v1003_v29 = vand.u32 2147483648, %v991_v61  ;;  %v1001_v51 = vand.u32 2147483647, %v991_v61  ;;  %vm997_vm9 = vweird.f32 %v991_v61 }
 0x10f   : > { %v1004_v62 = vor.u32 1.1754944e-38, %v1003_v29  ;;  %vm1002_vm13 = vcmp.eq.f32.partialorder %v1001_v51, 8.507059e+37 }
 0x113   : > { %v1212_v21 = vpop.eup %1211 }
 0x114   : > { %v993_v30 = vmul.f32 %v1212_v21, %v991_v61  ;;  %vm998_vm6 = vweird.f32 %v1212_v21 }
 0x115   : > { %vm999_vm10 = vmor %vm997_vm9, %vm998_vm6 }
 0x116   : > { %v994_v37 = vsub.f32 1.0, %v993_v30 }
 0x118   : > { %v995_v14 = vmul.f32 %v1212_v21, %v994_v37 }
 0x11a   : > { %v996_v42 = vadd.f32 %v1212_v21, %v995_v14 }
 0x11c   : > { %v1000_v40 = vsel %vm999_vm10, %v1212_v21, %v996_v42 }
 0x11d   : > { %v1005_v35 = vsel %vm1002_vm13, %v1004_v62, %v1000_v40 }
 0x11e   : > { %1007 = vst [vmem:[%s174_s28] sm:$0x1] %v1005_v35 }
 0x11f PF: > { %s13_s12 = sadd.s32 1, %s1219_s12  }
 0x120   : > { %p10_p5 = scmp.ge.s32.totalorder %s13_s12, 4  }
 0x122   :  { %12 = sbr.rel (!%p10_p5) target bundleno = 1 (0x1), region = 65 }

</bundles_post_ra>
